<compile_context>
chip_gen: v5e
topology: v5e:2x2
jax: 0.10.0
libtpu: 0.0.40
codegen_flags: <defaults>
</compile_context>

<pallas_src>
import functools

import jax
import jax.numpy as jnp
from jax import lax
from jax.experimental import pallas as pl
from jax.experimental.pallas import tpu as pltpu

# ---------------- synthetic config (small shapes) ----------------
NDF = 8            # cfg.GAN.DF_DIM
EF_DIM = 4         # cfg.GAN.CONDITION_DIM (only used by D_GET_LOGITS, never called by forward)
BN_EPS = 1e-5
LEAKY_SLOPE = 0.2
_LANE = 128

# Streamed (double-buffered) column budget, sized against v7x's 64 MiB/TC VMEM — do not
# grow toward v5e/v6e-era 128 MiB assumptions when scaling batch.
_STREAM_BYTES = 8 * 1024 * 1024

_PARALLEL = pltpu.CompilerParams(
    dimension_semantics=("parallel",),
    vmem_limit_bytes=32 * 1024 * 1024,
)
_ARBITRARY = pltpu.CompilerParams(
    dimension_semantics=("arbitrary",),
    vmem_limit_bytes=32 * 1024 * 1024,
)


def _round_up(x, m):
    return (x + m - 1) // m * m


def _cdiv(a, b):
    return (a + b - 1) // b


def _pick_m_tile(m, k, cout, *, min_tiles=1):
    """Lane-dense M tile (multiple of 128) sized against the streamed-VMEM budget.

    min_tiles>1 forces a split so a 'parallel' grid axis can shard across v7x's 2 TCs.
    Returns (tm, m_pad, n_tiles) with m_pad = tm * n_tiles.
    """
    per_col = 2 * 2 * (k + cout)                 # double-buffered bf16 patch col + bf16 out col
    cap = _STREAM_BYTES // max(per_col, 1)
    cap = max(_LANE, min(4096, cap // _LANE * _LANE))
    m_lane = _round_up(m, _LANE)
    n_tiles = max(min_tiles, _cdiv(m_lane, cap))
    tm = min(cap, _round_up(_cdiv(m_lane, n_tiles), _LANE))
    m_pad = _round_up(m_lane, tm)
    return tm, m_pad, m_pad // tm


# ---------------- Pallas kernels ----------------
def _leaky(v, slope):
    return jnp.where(v >= 0, v, slope * v)


def _conv_act_kernel(w_ref, p_ref, o_ref, *, slope):
    """Y^T tile = W_mat @ P^T tile (bf16 MXU, f32 acc) + fused LeakyReLU (layer without BN)."""
    y = jnp.dot(w_ref[...], p_ref[...], preferred_element_type=jnp.float32)
    o_ref[...] = _leaky(y, slope).astype(o_ref.dtype)


def _conv_bn_act_kernel(w_ref, p_ref, g_ref, b_ref, o_ref, *, slope, m_true):
    """Whole BN layer in one kernel: conv matmul + train-mode BN (batch stats) + LeakyReLU.

    Valid only when the full (K, M_pad) patch slab is a single tile (n_tiles == 1), so the
    per-channel statistics computed here ARE the global batch statistics.  All math in f32
    (v5e has no bf16 VPU/EUP path); cast to the output dtype only at the store.
    """
    y = jnp.dot(w_ref[...], p_ref[...], preferred_element_type=jnp.float32)   # (Cout, Mpad) f32
    cout, m_pad = y.shape
    if m_pad != m_true:
        # Explicit column mask: statistics never see the zero-padded columns, so this stays
        # correct even if a bias / pre-activation shift is ever fused into the matmul.
        mask = lax.broadcasted_iota(jnp.int32, (cout, m_pad), 1) < m_true
        y_sum = jnp.where(mask, y, 0.0)
    else:
        mask = None
        y_sum = y
    inv_m = 1.0 / m_true
    mean = jnp.sum(y_sum, axis=1, keepdims=True) * inv_m                      # (Cout, 1), XLU
    centered = y - mean
    cen_m = jnp.where(mask, centered, 0.0) if mask is not None else centered
    var = jnp.sum(cen_m * cen_m, axis=1, keepdims=True) * inv_m               # centered: no
    inv_std = lax.rsqrt(var + BN_EPS)                                         # cancellation
    v = centered * (g_ref[...] * inv_std) + b_ref[...]
    o_ref[...] = _leaky(v, slope).astype(o_ref.dtype)


def _conv_stats_kernel(w_ref, p_ref, y_ref, sum_ref, ssq_ref):
    """Fallback pass 1 (n_tiles > 1): matmul tile + per-channel sum / sum-of-squares
    accumulated directly in the VMEM-resident (Cout, 1) outputs ('arbitrary' grid axis)."""
    i = pl.program_id(0)
    y = jnp.dot(w_ref[...], p_ref[...], preferred_element_type=jnp.float32)
    y_ref[...] = y.astype(y_ref.dtype)                                        # bf16 store

    @pl.when(i == 0)
    def _():
        sum_ref[...] = jnp.zeros_like(sum_ref)
        ssq_ref[...] = jnp.zeros_like(ssq_ref)

    # Zero-padded patch columns give exactly y == 0 (no bias is fused into pass 1), so they
    # are statistics-neutral here; the divisor below is the true M.
    sum_ref[...] += jnp.sum(y, axis=1, keepdims=True)
    ssq_ref[...] += jnp.sum(y * y, axis=1, keepdims=True)


def _bn_act_kernel(scale_ref, shift_ref, y_ref, o_ref, *, slope):
    """Fallback pass 2: per-channel affine (BN) + LeakyReLU on lane-dense (Cout, tm) tiles.
    Loads bf16, computes in f32, stores bf16/f32."""
    v = y_ref[...].astype(jnp.float32) * scale_ref[...] + shift_ref[...]
    o_ref[...] = _leaky(v, slope).astype(o_ref.dtype)


# ---------------- conv building blocks ----------------
def im2col_t(x_cnhw, *, ksize, stride, pad):
    """Transposed im2col: (C, N, H, W) -> (C*K*K, N*Ho*Wo) bf16 (spatial on the 128 lanes).

    Row order matches w.reshape(Cout, Cin*K*K), so no weight transpose is needed.
    TODO(synk): replace with in-kernel shifted-dot / halo accumulation so the 4x-duplicated
    patch tensor is never materialized by XLA (and the whole net can fuse to one call).
    """
    c, n, h, w = x_cnhw.shape
    ho = (h + 2 * pad - ksize) // stride + 1
    wo = (w + 2 * pad - ksize) // stride + 1
    xp = jnp.pad(x_cnhw, ((0, 0), (0, 0), (pad, pad), (pad, pad)))
    taps = [xp[:, :, kh:kh + stride * ho:stride, kw:kw + stride * wo:stride]
            for kh in range(ksize) for kw in range(ksize)]
    pt = jnp.stack(taps, axis=1).reshape(c * ksize * ksize, n * ho * wo)
    return pt.astype(jnp.bfloat16), (n, ho, wo)


def conv_layer(x_cnhw, w_torch, *, bn, slope=LEAKY_SLOPE, out_dtype=jnp.bfloat16):
    """4x4 / stride-2 / pad-1 conv (+ optional train-mode BN) + LeakyReLU.

    x_cnhw: (Cin, N, H, W)  ->  (Cout, N, H/2, W/2), channel-major / lane-dense throughout.
    """
    cout = w_torch.shape[0]
    patches_t, (n, ho, wo) = im2col_t(x_cnhw, ksize=4, stride=2, pad=1)
    w_mat = w_torch.reshape(cout, -1).astype(jnp.bfloat16)          # (Cout, K) bf16 MXU input
    k = w_mat.shape[1]
    m = patches_t.shape[1]                                          # true N*Ho*Wo (stats divisor)

    # BN-free layer: force >= 2 tiles so the 'parallel' axis can use both v7x TensorCores.
    # BN layers: prefer a single tile so statistics + affine + activation fuse in one kernel.
    min_tiles = 2 if bn is None else 1
    tm, m_pad, n_tiles = _pick_m_tile(m, k, cout, min_tiles=min_tiles)
    if m_pad != m:
        patches_t = jnp.pad(patches_t, ((0, 0), (0, m_pad - m)))    # zero cols -> y == 0 there

    w_spec = pl.BlockSpec((cout, k), lambda i: (0, 0))              # constant index -> one fetch
    p_spec = pl.BlockSpec((k, tm), lambda i: (0, i))                # (consider pl.Buffered(3)
    y_spec = pl.BlockSpec((cout, tm), lambda i: (0, i))             #  here if n_tiles grows)
    vec_spec = pl.BlockSpec((cout, 1), lambda i: (0, 0))

    if bn is None:
        # Single fused pass: matmul + LeakyReLU, bf16 store.
        h = pl.pallas_call(
            functools.partial(_conv_act_kernel, slope=slope),
            out_shape=jax.ShapeDtypeStruct((cout, m_pad), out_dtype),
            grid=(n_tiles,),
            in_specs=[w_spec, p_spec],
            out_specs=y_spec,
            compiler_params=_PARALLEL,
        )(w_mat, patches_t)
    elif n_tiles == 1:
        # Whole layer in ONE kernel: matmul + batch stats + BN affine + LeakyReLU + store.
        h = pl.pallas_call(
            functools.partial(_conv_bn_act_kernel, slope=slope, m_true=m),
            out_shape=jax.ShapeDtypeStruct((cout, m_pad), out_dtype),
            grid=(1,),
            in_specs=[w_spec, p_spec, vec_spec, vec_spec],
            out_specs=y_spec,
            compiler_params=_ARBITRARY,
        )(w_mat, patches_t, bn["gamma"].reshape(cout, 1), bn["beta"].reshape(cout, 1))
    else:
        # General fallback (large batch): pass 1 = matmul tiles + accumulated stats
        # ('arbitrary' reduction axis -> forfeits megacore sharding, acceptable here),
        # tiny scale/shift math in JAX, pass 2 = fused affine + LeakyReLU.
        y_t, csum, cssq = pl.pallas_call(
            _conv_stats_kernel,
            out_shape=(jax.ShapeDtypeStruct((cout, m_pad), jnp.bfloat16),
                       jax.ShapeDtypeStruct((cout, 1), jnp.float32),
                       jax.ShapeDtypeStruct((cout, 1), jnp.float32)),
            grid=(n_tiles,),
            in_specs=[w_spec, p_spec],
            out_specs=(y_spec, vec_spec, vec_spec),
            compiler_params=_ARBITRARY,
        )(w_mat, patches_t)
        mean = csum[:, 0] / m
        # TODO(synk): E[x^2]-E[x]^2 can lose precision via cancellation at large activation
        # means; switch to a centered second pass / Welford if this path is used at scale.
        var = jnp.maximum(cssq[:, 0] / m - mean * mean, 0.0)
        scale = bn["gamma"] * lax.rsqrt(var + BN_EPS)
        shift = bn["beta"] - mean * scale
        h = pl.pallas_call(
            functools.partial(_bn_act_kernel, slope=slope),
            out_shape=jax.ShapeDtypeStruct((cout, m_pad), out_dtype),
            grid=(n_tiles,),
            in_specs=[vec_spec, vec_spec, y_spec],
            out_specs=y_spec,
            compiler_params=_PARALLEL,
        )(scale.reshape(cout, 1), shift.reshape(cout, 1), y_t)

    return h[:, :m].reshape(cout, n, ho, wo)


# ---------------- parameters (deterministic synthetic init) ----------------
def init_params(key):
    ndf = NDF
    ks = jax.random.split(key, 4)

    def conv_w(k, cout, cin, ksize):
        return 0.05 * jax.random.normal(k, (cout, cin, ksize, ksize), jnp.float32)

    def bn(c):
        return {"gamma": jnp.ones((c,), jnp.float32), "beta": jnp.zeros((c,), jnp.float32)}

    return {
        "w1": conv_w(ks[0], ndf, 3, 4),
        "w2": conv_w(ks[1], ndf * 2, ndf, 4), "bn2": bn(ndf * 2),
        "w3": conv_w(ks[2], ndf * 4, ndf * 2, 4), "bn3": bn(ndf * 4),
        "w4": conv_w(ks[3], ndf * 8, ndf * 4, 4), "bn4": bn(ndf * 8),
    }


# ---------------- module forward ----------------
def stage1d_forward(params, image_nchw):
    """STAGE1D_ResBlock.forward: img_embedding = encode_img(image), NCHW in / NCHW out (f32)."""
    x = jnp.transpose(image_nchw, (1, 0, 2, 3))                     # NCHW -> CNHW (channel-major)
    h = conv_layer(x, params["w1"], bn=None)                        # 64 -> 32 (bf16 interm.)
    h = conv_layer(h, params["w2"], bn=params["bn2"])               # 32 -> 16 (bf16 interm.)
    h = conv_layer(h, params["w3"], bn=params["bn3"])               # 16 -> 8  (bf16 interm.)
    h = conv_layer(h, params["w4"], bn=params["bn4"],
                   out_dtype=jnp.float32)                           # 8  -> 4  (f32 output)
    return jnp.transpose(h, (1, 0, 2, 3))                           # back to NCHW


# ---------------- pure-JAX f32 reference (correctness guard) ----------------
def _reference_forward(params, image):
    def conv(x, w):
        return lax.conv_general_dilated(x, w, window_strides=(2, 2),
                                        padding=((1, 1), (1, 1)),
                                        dimension_numbers=("NCHW", "OIHW", "NCHW"))

    def leaky(v):
        return jnp.where(v >= 0, v, LEAKY_SLOPE * v)

    def bn(v, p):
        mean = jnp.mean(v, axis=(0, 2, 3), keepdims=True)
        var = jnp.mean((v - mean) ** 2, axis=(0, 2, 3), keepdims=True)
        g = p["gamma"].reshape(1, -1, 1, 1)
        b = p["beta"].reshape(1, -1, 1, 1)
        return (v - mean) * lax.rsqrt(var + BN_EPS) * g + b

    h = leaky(conv(image, params["w1"]))
    h = leaky(bn(conv(h, params["w2"]), params["bn2"]))
    h = leaky(bn(conv(h, params["w3"]), params["bn3"]))
    h = leaky(bn(conv(h, params["w4"]), params["bn4"]))
    return h


if __name__ == "__main__":
    key = jax.random.PRNGKey(0)
    k_param, k_img = jax.random.split(key)
    params = init_params(k_param)

    B = 2
    image = jax.random.normal(k_img, (B, 3, 64, 64), jnp.float32)   # StackGAN stage-1 D input

    fwd = jax.jit(stage1d_forward)
    img_embedding = fwd(params, image)
    jax.block_until_ready(img_embedding)

    assert img_embedding.shape == (B, NDF * 8, 4, 4)
    assert img_embedding.dtype == jnp.float32

    # Scale-free comparison vs. f32 XLA reference (bf16 MXU inputs + bf16 intermediates).
    ref = _reference_forward(params, image)
    diff = img_embedding - ref
    rel_max = float(jnp.max(jnp.abs(diff)) / jnp.maximum(jnp.max(jnp.abs(ref)), 1e-6))
    rel_rms = float(jnp.sqrt(jnp.mean(diff * diff) / jnp.maximum(jnp.mean(ref * ref), 1e-12)))
    assert rel_max < 0.1, f"relative max-abs error too large: {rel_max}"
    assert rel_rms < 0.05, f"relative RMS error too large: {rel_rms}"

    print("KERNEL_OK")
</pallas_src>

<mosaic_0001>
module attributes {stable_mosaic.version = 11 : i64} {
  func.func @_conv_act_kernel(%arg0: i32, %arg1: memref<8x48xbf16, #tpu.memory_space<vmem>>, %arg2: memref<48x1024xbf16, #tpu.memory_space<vmem>>, %arg3: memref<8x1024xbf16, #tpu.memory_space<vmem>>) attributes {dimension_semantics = [#tpu.dimension_semantics<parallel>], iteration_bounds = array<i64: 2>, scalar_prefetch = 0 : i64, scratch_operands = 0 : i64, tpu.core_type = #tpu.core_type<tc>, window_params = [{pipeline_mode = #tpu.pipeline_mode<synchronous>, transform_indices = @transform_0, window_bounds = array<i64: 8, 48>}, {transform_indices = @transform_1, window_bounds = array<i64: 48, 1024>}, {transform_indices = @transform_2, window_bounds = array<i64: 8, 1024>}]} {
    %c0 = arith.constant 0 : index
    %c0_0 = arith.constant 0 : index
    %0 = vector.load %arg1[%c0, %c0_0] : memref<8x48xbf16, #tpu.memory_space<vmem>>, vector<8x48xbf16>
    %c0_1 = arith.constant 0 : index
    %c0_2 = arith.constant 0 : index
    %1 = vector.load %arg2[%c0_1, %c0_2] : memref<48x1024xbf16, #tpu.memory_space<vmem>>, vector<48x1024xbf16>
    %cst = arith.constant dense<0.000000e+00> : vector<8x1024xf32>
    %2 = tpu.matmul %0, %1, %cst {dimension_numbers = #tpu.dot_dimension_numbers<[1], [0], [0], [1], [0, 0, 1, 1], [], []>} : vector<8x48xbf16>, vector<48x1024xbf16>, vector<8x1024xf32> -> vector<8x1024xf32>
    %cst_3 = arith.constant 0.000000e+00 : f32
    %3 = vector.broadcast %cst_3 : f32 to vector<8x1024xf32>
    %4 = arith.cmpf oge, %2, %3 : vector<8x1024xf32>
    %cst_4 = arith.constant 2.000000e-01 : f32
    %5 = vector.broadcast %cst_4 : f32 to vector<8x1024xf32>
    %6 = arith.mulf %5, %2 : vector<8x1024xf32>
    %7 = arith.select %4, %2, %6 : vector<8x1024xi1>, vector<8x1024xf32>
    %8 = arith.truncf %7 : vector<8x1024xf32> to vector<8x1024xbf16>
    %c0_5 = arith.constant 0 : index
    %c0_6 = arith.constant 0 : index
    %9 = vector.load %arg3[%c0_5, %c0_6] : memref<8x1024xbf16, #tpu.memory_space<vmem>>, vector<8x1024xbf16>
    tpu.vector_store %arg3[%c0_5, %c0_6], %8 {strides = array<i32>} : memref<8x1024xbf16, #tpu.memory_space<vmem>>, vector<8x1024xbf16>,
    return
  }
  func.func @transform_0(%arg0: i32) -> (i32, i32) {
    %c0_i32 = arith.constant 0 : i32
    %c0_i32_0 = arith.constant 0 : i32
    %c0_i32_1 = arith.constant 0 : i32
    return %c0_i32, %c0_i32_0 : i32, i32
  }
  func.func @transform_1(%arg0: i32) -> (i32, i32) {
    %c0_i32 = arith.constant 0 : i32
    %c0_i32_0 = arith.constant 0 : i32
    return %c0_i32, %arg0 : i32, i32
  }
  func.func @transform_2(%arg0: i32) -> (i32, i32) {
    %c0_i32 = arith.constant 0 : i32
    %c0_i32_0 = arith.constant 0 : i32
    return %c0_i32, %arg0 : i32, i32
  }
}

module attributes {stable_mosaic.version = 11 : i64} {
  func.func @_conv_bn_act_kernel(%arg0: i32, %arg1: memref<16x128xbf16, #tpu.memory_space<vmem>>, %arg2: memref<128x512xbf16, #tpu.memory_space<vmem>>, %arg3: memref<16x1xf32, #tpu.memory_space<vmem>>, %arg4: memref<16x1xf32, #tpu.memory_space<vmem>>, %arg5: memref<16x512xbf16, #tpu.memory_space<vmem>>) attributes {dimension_semantics = [#tpu.dimension_semantics<arbitrary>], iteration_bounds = array<i64: 1>, scalar_prefetch = 0 : i64, scratch_operands = 0 : i64, tpu.core_type = #tpu.core_type<tc>, window_params = [{pipeline_mode = #tpu.pipeline_mode<synchronous>, transform_indices = @transform_0, window_bounds = array<i64: 16, 128>}, {transform_indices = @transform_1, window_bounds = array<i64: 128, 512>}, {pipeline_mode = #tpu.pipeline_mode<synchronous>, transform_indices = @transform_2, window_bounds = array<i64: 16, 1>}, {pipeline_mode = #tpu.pipeline_mode<synchronous>, transform_indices = @transform_3, window_bounds = array<i64: 16, 1>}, {transform_indices = @transform_4, window_bounds = array<i64: 16, 512>}]} {
    %c0 = arith.constant 0 : index
    %c0_0 = arith.constant 0 : index
    %0 = vector.load %arg1[%c0, %c0_0] : memref<16x128xbf16, #tpu.memory_space<vmem>>, vector<16x128xbf16>
    %c0_1 = arith.constant 0 : index
    %c0_2 = arith.constant 0 : index
    %1 = vector.load %arg2[%c0_1, %c0_2] : memref<128x512xbf16, #tpu.memory_space<vmem>>, vector<128x512xbf16>
    %cst = arith.constant dense<0.000000e+00> : vector<16x512xf32>
    %2 = tpu.matmul %0, %1, %cst {dimension_numbers = #tpu.dot_dimension_numbers<[1], [0], [0], [1], [0, 0, 1, 1], [], []>} : vector<16x128xbf16>, vector<128x512xbf16>, vector<16x512xf32> -> vector<16x512xf32>
    %cst_3 = arith.constant dense<0.000000e+00> : vector<16xf32>
    %3 = vector.multi_reduction <add>, %2, %cst_3 [1] : vector<16x512xf32> to vector<16xf32>
    %4 = vector.shape_cast %3 : vector<16xf32> to vector<16x1xf32>
    %cst_4 = arith.constant 0.001953125 : f32
    %5 = vector.broadcast %cst_4 : f32 to vector<16x1xf32>
    %6 = arith.mulf %4, %5 : vector<16x1xf32>
    %7 = vector.broadcast %6 : vector<16x1xf32> to vector<16x512xf32>
    %8 = arith.subf %2, %7 : vector<16x512xf32>
    %9 = arith.mulf %8, %8 : vector<16x512xf32>
    %cst_5 = arith.constant dense<0.000000e+00> : vector<16xf32>
    %10 = vector.multi_reduction <add>, %9, %cst_5 [1] : vector<16x512xf32> to vector<16xf32>
    %11 = vector.shape_cast %10 : vector<16xf32> to vector<16x1xf32>
    %cst_6 = arith.constant 0.001953125 : f32
    %12 = vector.broadcast %cst_6 : f32 to vector<16x1xf32>
    %13 = arith.mulf %11, %12 : vector<16x1xf32>
    %cst_7 = arith.constant 9.99999974E-6 : f32
    %14 = vector.broadcast %cst_7 : f32 to vector<16x1xf32>
    %15 = arith.addf %13, %14 : vector<16x1xf32>
    %16 = math.rsqrt %15 : vector<16x1xf32>
    %c0_8 = arith.constant 0 : index
    %c0_9 = arith.constant 0 : index
    %17 = vector.load %arg3[%c0_8, %c0_9] : memref<16x1xf32, #tpu.memory_space<vmem>>, vector<16x1xf32>
    %18 = arith.mulf %17, %16 : vector<16x1xf32>
    %19 = vector.broadcast %18 : vector<16x1xf32> to vector<16x512xf32>
    %20 = arith.mulf %8, %19 : vector<16x512xf32>
    %c0_10 = arith.constant 0 : index
    %c0_11 = arith.constant 0 : index
    %21 = vector.load %arg4[%c0_10, %c0_11] : memref<16x1xf32, #tpu.memory_space<vmem>>, vector<16x1xf32>
    %22 = vector.broadcast %21 : vector<16x1xf32> to vector<16x512xf32>
    %23 = arith.addf %20, %22 : vector<16x512xf32>
    %cst_12 = arith.constant 0.000000e+00 : f32
    %24 = vector.broadcast %cst_12 : f32 to vector<16x512xf32>
    %25 = arith.cmpf oge, %23, %24 : vector<16x512xf32>
    %cst_13 = arith.constant 2.000000e-01 : f32
    %26 = vector.broadcast %cst_13 : f32 to vector<16x512xf32>
    %27 = arith.mulf %26, %23 : vector<16x512xf32>
    %28 = arith.select %25, %23, %27 : vector<16x512xi1>, vector<16x512xf32>
    %29 = arith.truncf %28 : vector<16x512xf32> to vector<16x512xbf16>
    %c0_14 = arith.constant 0 : index
    %c0_15 = arith.constant 0 : index
    %30 = vector.load %arg5[%c0_14, %c0_15] : memref<16x512xbf16, #tpu.memory_space<vmem>>, vector<16x512xbf16>
    tpu.vector_store %arg5[%c0_14, %c0_15], %29 {strides = array<i32>} : memref<16x512xbf16, #tpu.memory_space<vmem>>, vector<16x512xbf16>,
    return
  }
  func.func @transform_0(%arg0: i32) -> (i32, i32) {
    %c0_i32 = arith.constant 0 : i32
    %c0_i32_0 = arith.constant 0 : i32
    %c0_i32_1 = arith.constant 0 : i32
    return %c0_i32, %c0_i32_0 : i32, i32
  }
  func.func @transform_1(%arg0: i32) -> (i32, i32) {
    %c0_i32 = arith.constant 0 : i32
    %c0_i32_0 = arith.constant 0 : i32
    return %c0_i32, %arg0 : i32, i32
  }
  func.func @transform_2(%arg0: i32) -> (i32, i32) {
    %c0_i32 = arith.constant 0 : i32
    %c0_i32_0 = arith.constant 0 : i32
    %c0_i32_1 = arith.constant 0 : i32
    return %c0_i32, %c0_i32_0 : i32, i32
  }
  func.func @transform_3(%arg0: i32) -> (i32, i32) {
    %c0_i32 = arith.constant 0 : i32
    %c0_i32_0 = arith.constant 0 : i32
    %c0_i32_1 = arith.constant 0 : i32
    return %c0_i32, %c0_i32_0 : i32, i32
  }
  func.func @transform_4(%arg0: i32) -> (i32, i32) {
    %c0_i32 = arith.constant 0 : i32
    %c0_i32_0 = arith.constant 0 : i32
    return %c0_i32, %arg0 : i32, i32
  }
}

module attributes {stable_mosaic.version = 11 : i64} {
  func.func @_conv_bn_act_kernel(%arg0: i32, %arg1: memref<32x256xbf16, #tpu.memory_space<vmem>>, %arg2: memref<256x128xbf16, #tpu.memory_space<vmem>>, %arg3: memref<32x1xf32, #tpu.memory_space<vmem>>, %arg4: memref<32x1xf32, #tpu.memory_space<vmem>>, %arg5: memref<32x128xbf16, #tpu.memory_space<vmem>>) attributes {dimension_semantics = [#tpu.dimension_semantics<arbitrary>], iteration_bounds = array<i64: 1>, scalar_prefetch = 0 : i64, scratch_operands = 0 : i64, tpu.core_type = #tpu.core_type<tc>, window_params = [{pipeline_mode = #tpu.pipeline_mode<synchronous>, transform_indices = @transform_0, window_bounds = array<i64: 32, 256>}, {transform_indices = @transform_1, window_bounds = array<i64: 256, 128>}, {pipeline_mode = #tpu.pipeline_mode<synchronous>, transform_indices = @transform_2, window_bounds = array<i64: 32, 1>}, {pipeline_mode = #tpu.pipeline_mode<synchronous>, transform_indices = @transform_3, window_bounds = array<i64: 32, 1>}, {transform_indices = @transform_4, window_bounds = array<i64: 32, 128>}]} {
    %c0 = arith.constant 0 : index
    %c0_0 = arith.constant 0 : index
    %0 = vector.load %arg1[%c0, %c0_0] : memref<32x256xbf16, #tpu.memory_space<vmem>>, vector<32x256xbf16>
    %c0_1 = arith.constant 0 : index
    %c0_2 = arith.constant 0 : index
    %1 = vector.load %arg2[%c0_1, %c0_2] : memref<256x128xbf16, #tpu.memory_space<vmem>>, vector<256x128xbf16>
    %cst = arith.constant dense<0.000000e+00> : vector<32x128xf32>
    %2 = tpu.matmul %0, %1, %cst {dimension_numbers = #tpu.dot_dimension_numbers<[1], [0], [0], [1], [0, 0, 1, 1], [], []>} : vector<32x256xbf16>, vector<256x128xbf16>, vector<32x128xf32> -> vector<32x128xf32>
    %cst_3 = arith.constant dense<0.000000e+00> : vector<32xf32>
    %3 = vector.multi_reduction <add>, %2, %cst_3 [1] : vector<32x128xf32> to vector<32xf32>
    %4 = vector.shape_cast %3 : vector<32xf32> to vector<32x1xf32>
    %cst_4 = arith.constant 7.812500e-03 : f32
    %5 = vector.broadcast %cst_4 : f32 to vector<32x1xf32>
    %6 = arith.mulf %4, %5 : vector<32x1xf32>
    %7 = vector.broadcast %6 : vector<32x1xf32> to vector<32x128xf32>
    %8 = arith.subf %2, %7 : vector<32x128xf32>
    %9 = arith.mulf %8, %8 : vector<32x128xf32>
    %cst_5 = arith.constant dense<0.000000e+00> : vector<32xf32>
    %10 = vector.multi_reduction <add>, %9, %cst_5 [1] : vector<32x128xf32> to vector<32xf32>
    %11 = vector.shape_cast %10 : vector<32xf32> to vector<32x1xf32>
    %cst_6 = arith.constant 7.812500e-03 : f32
    %12 = vector.broadcast %cst_6 : f32 to vector<32x1xf32>
    %13 = arith.mulf %11, %12 : vector<32x1xf32>
    %cst_7 = arith.constant 9.99999974E-6 : f32
    %14 = vector.broadcast %cst_7 : f32 to vector<32x1xf32>
    %15 = arith.addf %13, %14 : vector<32x1xf32>
    %16 = math.rsqrt %15 : vector<32x1xf32>
    %c0_8 = arith.constant 0 : index
    %c0_9 = arith.constant 0 : index
    %17 = vector.load %arg3[%c0_8, %c0_9] : memref<32x1xf32, #tpu.memory_space<vmem>>, vector<32x1xf32>
    %18 = arith.mulf %17, %16 : vector<32x1xf32>
    %19 = vector.broadcast %18 : vector<32x1xf32> to vector<32x128xf32>
    %20 = arith.mulf %8, %19 : vector<32x128xf32>
    %c0_10 = arith.constant 0 : index
    %c0_11 = arith.constant 0 : index
    %21 = vector.load %arg4[%c0_10, %c0_11] : memref<32x1xf32, #tpu.memory_space<vmem>>, vector<32x1xf32>
    %22 = vector.broadcast %21 : vector<32x1xf32> to vector<32x128xf32>
    %23 = arith.addf %20, %22 : vector<32x128xf32>
    %cst_12 = arith.constant 0.000000e+00 : f32
    %24 = vector.broadcast %cst_12 : f32 to vector<32x128xf32>
    %25 = arith.cmpf oge, %23, %24 : vector<32x128xf32>
    %cst_13 = arith.constant 2.000000e-01 : f32
    %26 = vector.broadcast %cst_13 : f32 to vector<32x128xf32>
    %27 = arith.mulf %26, %23 : vector<32x128xf32>
    %28 = arith.select %25, %23, %27 : vector<32x128xi1>, vector<32x128xf32>
    %29 = arith.truncf %28 : vector<32x128xf32> to vector<32x128xbf16>
    %c0_14 = arith.constant 0 : index
    %c0_15 = arith.constant 0 : index
    %30 = vector.load %arg5[%c0_14, %c0_15] : memref<32x128xbf16, #tpu.memory_space<vmem>>, vector<32x128xbf16>
    tpu.vector_store %arg5[%c0_14, %c0_15], %29 {strides = array<i32>} : memref<32x128xbf16, #tpu.memory_space<vmem>>, vector<32x128xbf16>,
    return
  }
  func.func @transform_0(%arg0: i32) -> (i32, i32) {
    %c0_i32 = arith.constant 0 : i32
    %c0_i32_0 = arith.constant 0 : i32
    %c0_i32_1 = arith.constant 0 : i32
    return %c0_i32, %c0_i32_0 : i32, i32
  }
  func.func @transform_1(%arg0: i32) -> (i32, i32) {
    %c0_i32 = arith.constant 0 : i32
    %c0_i32_0 = arith.constant 0 : i32
    return %c0_i32, %arg0 : i32, i32
  }
  func.func @transform_2(%arg0: i32) -> (i32, i32) {
    %c0_i32 = arith.constant 0 : i32
    %c0_i32_0 = arith.constant 0 : i32
    %c0_i32_1 = arith.constant 0 : i32
    return %c0_i32, %c0_i32_0 : i32, i32
  }
  func.func @transform_3(%arg0: i32) -> (i32, i32) {
    %c0_i32 = arith.constant 0 : i32
    %c0_i32_0 = arith.constant 0 : i32
    %c0_i32_1 = arith.constant 0 : i32
    return %c0_i32, %c0_i32_0 : i32, i32
  }
  func.func @transform_4(%arg0: i32) -> (i32, i32) {
    %c0_i32 = arith.constant 0 : i32
    %c0_i32_0 = arith.constant 0 : i32
    return %c0_i32, %arg0 : i32, i32
  }
}

module attributes {stable_mosaic.version = 11 : i64} {
  func.func @_conv_bn_act_kernel(%arg0: i32, %arg1: memref<64x512xbf16, #tpu.memory_space<vmem>>, %arg2: memref<512x128xbf16, #tpu.memory_space<vmem>>, %arg3: memref<64x1xf32, #tpu.memory_space<vmem>>, %arg4: memref<64x1xf32, #tpu.memory_space<vmem>>, %arg5: memref<64x128xf32, #tpu.memory_space<vmem>>) attributes {dimension_semantics = [#tpu.dimension_semantics<arbitrary>], iteration_bounds = array<i64: 1>, scalar_prefetch = 0 : i64, scratch_operands = 0 : i64, tpu.core_type = #tpu.core_type<tc>, window_params = [{pipeline_mode = #tpu.pipeline_mode<synchronous>, transform_indices = @transform_0, window_bounds = array<i64: 64, 512>}, {transform_indices = @transform_1, window_bounds = array<i64: 512, 128>}, {pipeline_mode = #tpu.pipeline_mode<synchronous>, transform_indices = @transform_2, window_bounds = array<i64: 64, 1>}, {pipeline_mode = #tpu.pipeline_mode<synchronous>, transform_indices = @transform_3, window_bounds = array<i64: 64, 1>}, {transform_indices = @transform_4, window_bounds = array<i64: 64, 128>}]} {
    %c0 = arith.constant 0 : index
    %c0_0 = arith.constant 0 : index
    %0 = vector.load %arg1[%c0, %c0_0] : memref<64x512xbf16, #tpu.memory_space<vmem>>, vector<64x512xbf16>
    %c0_1 = arith.constant 0 : index
    %c0_2 = arith.constant 0 : index
    %1 = vector.load %arg2[%c0_1, %c0_2] : memref<512x128xbf16, #tpu.memory_space<vmem>>, vector<512x128xbf16>
    %cst = arith.constant dense<0.000000e+00> : vector<64x128xf32>
    %2 = tpu.matmul %0, %1, %cst {dimension_numbers = #tpu.dot_dimension_numbers<[1], [0], [0], [1], [0, 0, 1, 1], [], []>} : vector<64x512xbf16>, vector<512x128xbf16>, vector<64x128xf32> -> vector<64x128xf32>
    %3 = tpu.iota {dimensions = array<i32: 1>} : vector<64x128xi32>
    %c32_i32 = arith.constant 32 : i32
    %4 = vector.broadcast %c32_i32 : i32 to vector<64x128xi32>
    %5 = arith.cmpi slt, %3, %4 : vector<64x128xi32>
    %cst_3 = arith.constant 0.000000e+00 : f32
    %6 = vector.broadcast %cst_3 : f32 to vector<64x128xf32>
    %7 = arith.select %5, %2, %6 : vector<64x128xi1>, vector<64x128xf32>
    %cst_4 = arith.constant dense<0.000000e+00> : vector<64xf32>
    %8 = vector.multi_reduction <add>, %7, %cst_4 [1] : vector<64x128xf32> to vector<64xf32>
    %9 = vector.shape_cast %8 : vector<64xf32> to vector<64x1xf32>
    %cst_5 = arith.constant 3.125000e-02 : f32
    %10 = vector.broadcast %cst_5 : f32 to vector<64x1xf32>
    %11 = arith.mulf %9, %10 : vector<64x1xf32>
    %12 = vector.broadcast %11 : vector<64x1xf32> to vector<64x128xf32>
    %13 = arith.subf %2, %12 : vector<64x128xf32>
    %cst_6 = arith.constant 0.000000e+00 : f32
    %14 = vector.broadcast %cst_6 : f32 to vector<64x128xf32>
    %15 = arith.select %5, %13, %14 : vector<64x128xi1>, vector<64x128xf32>
    %16 = arith.mulf %15, %15 : vector<64x128xf32>
    %cst_7 = arith.constant dense<0.000000e+00> : vector<64xf32>
    %17 = vector.multi_reduction <add>, %16, %cst_7 [1] : vector<64x128xf32> to vector<64xf32>
    %18 = vector.shape_cast %17 : vector<64xf32> to vector<64x1xf32>
    %cst_8 = arith.constant 3.125000e-02 : f32
    %19 = vector.broadcast %cst_8 : f32 to vector<64x1xf32>
    %20 = arith.mulf %18, %19 : vector<64x1xf32>
    %cst_9 = arith.constant 9.99999974E-6 : f32
    %21 = vector.broadcast %cst_9 : f32 to vector<64x1xf32>
    %22 = arith.addf %20, %21 : vector<64x1xf32>
    %23 = math.rsqrt %22 : vector<64x1xf32>
    %c0_10 = arith.constant 0 : index
    %c0_11 = arith.constant 0 : index
    %24 = vector.load %arg3[%c0_10, %c0_11] : memref<64x1xf32, #tpu.memory_space<vmem>>, vector<64x1xf32>
    %25 = arith.mulf %24, %23 : vector<64x1xf32>
    %26 = vector.broadcast %25 : vector<64x1xf32> to vector<64x128xf32>
    %27 = arith.mulf %13, %26 : vector<64x128xf32>
    %c0_12 = arith.constant 0 : index
    %c0_13 = arith.constant 0 : index
    %28 = vector.load %arg4[%c0_12, %c0_13] : memref<64x1xf32, #tpu.memory_space<vmem>>, vector<64x1xf32>
    %29 = vector.broadcast %28 : vector<64x1xf32> to vector<64x128xf32>
    %30 = arith.addf %27, %29 : vector<64x128xf32>
    %cst_14 = arith.constant 0.000000e+00 : f32
    %31 = vector.broadcast %cst_14 : f32 to vector<64x128xf32>
    %32 = arith.cmpf oge, %30, %31 : vector<64x128xf32>
    %cst_15 = arith.constant 2.000000e-01 : f32
    %33 = vector.broadcast %cst_15 : f32 to vector<64x128xf32>
    %34 = arith.mulf %33, %30 : vector<64x128xf32>
    %35 = arith.select %32, %30, %34 : vector<64x128xi1>, vector<64x128xf32>
    %c0_16 = arith.constant 0 : index
    %c0_17 = arith.constant 0 : index
    %36 = vector.load %arg5[%c0_16, %c0_17] : memref<64x128xf32, #tpu.memory_space<vmem>>, vector<64x128xf32>
    tpu.vector_store %arg5[%c0_16, %c0_17], %35 {strides = array<i32>} : memref<64x128xf32, #tpu.memory_space<vmem>>, vector<64x128xf32>,
    return
  }
  func.func @transform_0(%arg0: i32) -> (i32, i32) {
    %c0_i32 = arith.constant 0 : i32
    %c0_i32_0 = arith.constant 0 : i32
    %c0_i32_1 = arith.constant 0 : i32
    return %c0_i32, %c0_i32_0 : i32, i32
  }
  func.func @transform_1(%arg0: i32) -> (i32, i32) {
    %c0_i32 = arith.constant 0 : i32
    %c0_i32_0 = arith.constant 0 : i32
    return %c0_i32, %arg0 : i32, i32
  }
  func.func @transform_2(%arg0: i32) -> (i32, i32) {
    %c0_i32 = arith.constant 0 : i32
    %c0_i32_0 = arith.constant 0 : i32
    %c0_i32_1 = arith.constant 0 : i32
    return %c0_i32, %c0_i32_0 : i32, i32
  }
  func.func @transform_3(%arg0: i32) -> (i32, i32) {
    %c0_i32 = arith.constant 0 : i32
    %c0_i32_0 = arith.constant 0 : i32
    %c0_i32_1 = arith.constant 0 : i32
    return %c0_i32, %c0_i32_0 : i32, i32
  }
  func.func @transform_4(%arg0: i32) -> (i32, i32) {
    %c0_i32 = arith.constant 0 : i32
    %c0_i32_0 = arith.constant 0 : i32
    return %c0_i32, %arg0 : i32, i32
  }
}

</mosaic_0001>

<bundles_post_ra>
// kernel: stage1d_forward.4
= control target key start
LH: loop header
LB: loop body
LE: loop exit
PB: predicated region body
PF: predicated region fallthrough
CT: control target
= control target key end

     0   :  { %s765_s9 = smov 0   ;;  %s767_s10 = smov 0   ;;  %s936_s0 = inlined_call_operand.vmem [shape: bf16[8,48], index: 0, kind: input, shape index: {}]   ;;  %s937_s1 = inlined_call_operand.vmem [shape: bf16[48,2048], index: 1, kind: input, shape index: {}]   ;;  %s938_s2 = inlined_call_operand.vmem [shape: bf16[8,2048], index: 2, kind: output, shape index: {}]  }
   0x1   :  { %s769_s11 = smov 0  }
   0x2 LB: > { %s560_s12 = sadd.s32 4294967295, %s748_s11   ;;  %s782_s13 = sadd.s32 1, %s748_s11   ;;  %s748_s11 = sphi %s769_s11, %s941_s11   ;;  %s744_s10 = sphi %s767_s10, %s940_s10   ;;  %s740_s9 = sphi %s765_s9, %s939_s9  }
   0x3   : > { %s37_s14 = ssub.s32 %s748_s11, %s782_s13  ;;  %s40_s15 = sadd.s32 1, %s744_s10 }
   0x4   : > { %p38_p0 = scmp.eq.s32.totalorder %s37_s14, 0  ;;  %p47_p1 = scmp.ne.s32.totalorder %s744_s10, %s740_s9 }
   0x5   : > { %p48_p2 = scmp.eq.s32.totalorder %s748_s11, 0  ;;  %p563_p4 = scmp.ge.s32.totalorder %s748_s11, 2 }
   0x6   : > { %s791_s16 = scalar_select %p38_p0, %s744_s10, %s40_s15  }
   0x7   : > { %p49_p3 = por %p48_p2, %p47_p1  ;;  %102 = sbr.rel (%p563_p4) target bundleno = 40 (0x28), region = 20 }
   0xc   : > { %105 = sbr.rel (!%p49_p3) target bundleno = 40 (0x28), region = 24  ;;  %s107_s17 = sand.u32 (%p49_p3), 1, %s744_s10  }
   0xd   : > { %s675_s18 = sshll.u32 (%p49_p3), %s748_s11, 5  ;;  %s700_s19 = smul.u32 (%p49_p3), 192, %s107_s17 }
   0xe   : > { %s799_s22 = scalar_lea.vmem (%p49_p3), %s937_s1, %s675_s18 }
   0xf   : > { %v125_v0 = vld [vmem:[%s799_s22] sm:$0xff] (%p49_p3)  ;;  %v127_v1 = vld [vmem:[%s799_s22 + $0x8] sm:$0xff] (%p49_p3)  ;;  %v129_v2 = vld [vmem:[%s799_s22 + $0x10] sm:$0xff] (%p49_p3)  ;;  %s804_s23 = scalar_lea.vmem (%p49_p3), [#allocation2], %s700_s19 }
  0x10   : > { %126 = vst [vmem:[%s804_s23] sm:$0xff] (%p49_p3), %v125_v0  ;;  %v131_v3 = vld [vmem:[%s799_s22 + $0x18] sm:$0xff] (%p49_p3)  ;;  %v133_v4 = vld [vmem:[%s799_s22 + $0x40] sm:$0xff] (%p49_p3)  ;;  %v135_v5 = vld [vmem:[%s799_s22 + $0x48] sm:$0xff] (%p49_p3) }
  0x11   : > { %128 = vst [vmem:[%s804_s23 + $0x8] sm:$0xff] %v127_v1  ;;  %v137_v6 = vld [vmem:[%s799_s22 + $0x50] sm:$0xff]  ;;  %v139_v7 = vld [vmem:[%s799_s22 + $0x58] sm:$0xff]  ;;  %v141_v8 = vld [vmem:[%s799_s22 + $0x80] sm:$0xff] }
  0x12   : > { %130 = vst [vmem:[%s804_s23 + $0x10] sm:$0xff] %v129_v2  ;;  %v143_v9 = vld [vmem:[%s799_s22 + $0x88] sm:$0xff]  ;;  %v145_v10 = vld [vmem:[%s799_s22 + $0x90] sm:$0xff]  ;;  %v147_v11 = vld [vmem:[%s799_s22 + $0x98] sm:$0xff] }
  0x13   : > { %132 = vst [vmem:[%s804_s23 + $0x18] sm:$0xff] %v131_v3  ;;  %v149_v12 = vld [vmem:[%s799_s22 + $0xc0] sm:$0xff]  ;;  %v151_v13 = vld [vmem:[%s799_s22 + $0xc8] sm:$0xff]  ;;  %v153_v14 = vld [vmem:[%s799_s22 + $0xd0] sm:$0xff] }
  0x14   : > { %134 = vst [vmem:[%s804_s23 + $0x20] sm:$0xff] %v133_v4  ;;  %v155_v15 = vld [vmem:[%s799_s22 + $0xd8] sm:$0xff]  ;;  %v157_v16 = vld [vmem:[%s799_s22 + $0x100] sm:$0xff]  ;;  %v159_v17 = vld [vmem:[%s799_s22 + $0x108] sm:$0xff] }
  0x15   : > { %136 = vst [vmem:[%s804_s23 + $0x28] sm:$0xff] %v135_v5  ;;  %v161_v18 = vld [vmem:[%s799_s22 + $0x110] sm:$0xff]  ;;  %v163_v19 = vld [vmem:[%s799_s22 + $0x118] sm:$0xff]  ;;  %v165_v20 = vld [vmem:[%s799_s22 + $0x140] sm:$0xff] }
  0x16   : > { %138 = vst [vmem:[%s804_s23 + $0x30] sm:$0xff] %v137_v6  ;;  %v167_v21 = vld [vmem:[%s799_s22 + $0x148] sm:$0xff]  ;;  %v169_v22 = vld [vmem:[%s799_s22 + $0x150] sm:$0xff]  ;;  %v171_v23 = vld [vmem:[%s799_s22 + $0x158] sm:$0xff] }
  0x17   : > { %140 = vst [vmem:[%s804_s23 + $0x38] sm:$0xff] %v139_v7 }
  0x18   : > { %142 = vst [vmem:[%s804_s23 + $0x40] sm:$0xff] %v141_v8 }
  0x19   : > { %144 = vst [vmem:[%s804_s23 + $0x48] sm:$0xff] %v143_v9 }
  0x1a   : > { %146 = vst [vmem:[%s804_s23 + $0x50] sm:$0xff] %v145_v10 }
  0x1b   : > { %148 = vst [vmem:[%s804_s23 + $0x58] sm:$0xff] %v147_v11 }
  0x1c   : > { %150 = vst [vmem:[%s804_s23 + $0x60] sm:$0xff] %v149_v12 }
  0x1d   : > { %152 = vst [vmem:[%s804_s23 + $0x68] sm:$0xff] %v151_v13 }
  0x1e   : > { %154 = vst [vmem:[%s804_s23 + $0x70] sm:$0xff] %v153_v14 }
  0x1f   : > { %156 = vst [vmem:[%s804_s23 + $0x78] sm:$0xff] %v155_v15 }
  0x20   : > { %158 = vst [vmem:[%s804_s23 + $0x80] sm:$0xff] %v157_v16 }
  0x21   : > { %160 = vst [vmem:[%s804_s23 + $0x88] sm:$0xff] %v159_v17 }
  0x22   : > { %162 = vst [vmem:[%s804_s23 + $0x90] sm:$0xff] %v161_v18 }
  0x23   : > { %164 = vst [vmem:[%s804_s23 + $0x98] sm:$0xff] %v163_v19 }
  0x24   : > { %166 = vst [vmem:[%s804_s23 + $0xa0] sm:$0xff] %v165_v20 }
  0x25   : > { %168 = vst [vmem:[%s804_s23 + $0xa8] sm:$0xff] %v167_v21 }
  0x26   : > { %170 = vst [vmem:[%s804_s23 + $0xb0] sm:$0xff] %v169_v22 }
  0x27   : > { %172 = vst [vmem:[%s804_s23 + $0xb8] sm:$0xff] %v171_v23 }
  0x28 PF: > { %p566_p5 = scmp.ge.s32.totalorder %s748_s11, 1  ;;  %p177_p6 = scmp.lt.s32.totalorder %s748_s11, 3 }
  0x2a   : > { %p178_p7 = pnand %p566_p5, %p177_p6 }
  0x2b   : > { %s184_s24 = sand.u32 (!%p178_p7), 1, %s740_s9   ;;  %s567_s29 = sshll.u32 (!%p178_p7), %s560_s12, 3 }
  0x2c   : > { %181 = sbr.rel (%p178_p7) target bundleno = 222 (0xde), region = 47  ;;  %p207_p8 = scmp.lt.s32.totalorder (!%p178_p7), %s567_s29, 15 }
  0x2d   : > { %s701_s25 = smul.u32 (!%p178_p7), 192, %s184_s24 }
  0x2f   : > { %s854_s26 = scalar_lea.vmem (!%p178_p7), [#allocation2], %s701_s25 }
  0x31   : > { %v635_v24 = vld [vmem:[%s854_s26 + $0x80] sm:$0xf]  ;;  %v692_v26 = vld [vmem:[%s854_s26 + $0x84] sm:$0xf]  ;;  %v643_v29 = vld [vmem:[%s854_s26 + $0x88] sm:$0xf] }
  0x32   : > { %v696_v25 = vld [vmem:[%s854_s26 + $0x9c] sm:$0xf0]  ;;  %v637_v28 = vld [vmem:[%s854_s26 + $0xa0] sm:$0xf0]  ;;  %v697_v30 = vld [vmem:[%s854_s26 + $0xa4] sm:$0xf0] }
  0x33   : > { %v636_v27 = vor.u32 %v696_v25, %v635_v24  ;;  %v640_v31 = vor.u32 %v692_v26, %v637_v28  ;;  %v644_v32 = vor.u32 %v697_v30, %v643_v29  ;;  %v693_v33 = vld [vmem:[%s854_s26 + $0x8c] sm:$0xf]  ;;  %v603_v35 = vld [vmem:[%s854_s26 + $0x40] sm:$0xf]  ;;  %v684_v38 = vld [vmem:[%s854_s26 + $0x44] sm:$0xf] }
  0x34   : > { %v645_v34 = vld [vmem:[%s854_s26 + $0xa8] sm:$0xf0]  ;;  %v688_v37 = vld [vmem:[%s854_s26 + $0x5c] sm:$0xf0]  ;;  %v605_v39 = vld [vmem:[%s854_s26 + $0x60] sm:$0xf0] }
  0x35   : > { %367 = vmatpush.bf16.msra.mxu0 %v636_v27  ;;  %v648_v36 = vor.u32 %v693_v33, %v645_v34  ;;  %vm358_vm0 = vcmask 392192   ;;  %380 = vmatpush.bf16.msra.mxu1 %v640_v31  ;;  %v604_v40 = vor.u32 %v688_v37, %v603_v35  ;;  %v608_v41 = vor.u32 %v684_v38, %v605_v39  ;;  %v611_v42 = vld [vmem:[%s854_s26 + $0x48] sm:$0xf]  ;;  %v685_v44 = vld [vmem:[%s854_s26 + $0x4c] sm:$0xf]  ;;  %s943_s29 = smov (!%p207_p8, %s567_s29), 15 }
  0x36   : > { %393 = vmatpush.bf16.msra.mxu2 %v644_v32  ;;  %v689_v43 = vld [vmem:[%s854_s26 + $0x64] sm:$0xf0]  ;;  %v613_v46 = vld [vmem:[%s854_s26 + $0x68] sm:$0xf0]  ;;  %v571_v47 = vld [vmem:[%s854_s26] sm:$0xf] }
  0x37   : > { %406 = vmatpush.bf16.msra.mxu3 %v648_v36  ;;  %v612_v45 = vor.u32 %v689_v43, %v611_v42  ;;  %v680_v48 = vld [vmem:[%s854_s26 + $0x1c] sm:$0xf0]  ;;  %v616_v49 = vor.u32 %v685_v44, %v613_v46  ;;  %v676_v50 = vld [vmem:[%s854_s26 + $0x4] sm:$0xf]  ;;  %v579_v52 = vld [vmem:[%s854_s26 + $0x8] sm:$0xf] }
  0x38   : > { %v573_v51 = vld [vmem:[%s854_s26 + $0x20] sm:$0xf0]  ;;  %v572_v53 = vor.u32 %v680_v48, %v571_v47  ;;  %v681_v54 = vld [vmem:[%s854_s26 + $0x24] sm:$0xf0]  ;;  %v677_v55 = vld [vmem:[%s854_s26 + $0xc] sm:$0xf] }
  0x39   : > { %368 = vmatpush.bf16.msra.mxu0 %v604_v40  ;;  %v581_v56 = vld [vmem:[%s854_s26 + $0x28] sm:$0xf0]  ;;  %381 = vmatpush.bf16.msra.mxu1 %v608_v41  ;;  %v576_v57 = vor.u32 %v676_v50, %v573_v51  ;;  %v580_v58 = vor.u32 %v681_v54, %v579_v52  ;;  %v659_v59 = vld [vmem:[%s854_s26 + $0x98] sm:$0xf]  ;;  %v695_v61 = vld [vmem:[%s854_s26 + $0x9c] sm:$0xf] }
  0x3a   : > { %394 = vmatpush.bf16.msra.mxu2 %v612_v45  ;;  %v699_v60 = vld [vmem:[%s854_s26 + $0xb4] sm:$0xf0]  ;;  %v584_v62 = vor.u32 %v677_v55, %v581_v56  ;;  %v213_v63 = vld [vmem:[%s936_s0] sm:$0xf]  ;;  %v661_v1 = vld [vmem:[%s854_s26 + $0xb8] sm:$0xf0] }
  0x3b   : > { %407 = vmatpush.bf16.msra.mxu3 %v616_v49  ;;  %v660_v0 = vor.u32 %v699_v60, %v659_v59  ;;  %v651_v2 = vld [vmem:[%s854_s26 + $0x90] sm:$0xf]  ;;  %v664_v4 = vor.u32 %v695_v61, %v661_v1  ;;  %v694_v5 = vld [vmem:[%s854_s26 + $0x94] sm:$0xf]  ;;  %v627_v7 = vld [vmem:[%s854_s26 + $0x58] sm:$0xf] }
  0x3c   : > { %v698_v3 = vld [vmem:[%s854_s26 + $0xac] sm:$0xf0]  ;;  %v653_v6 = vld [vmem:[%s854_s26 + $0xb0] sm:$0xf0]  ;;  %v691_v8 = vld [vmem:[%s854_s26 + $0x74] sm:$0xf0] }
  0x3d   : > { %369 = vmatpush.bf16.msra.mxu0 %v572_v53  ;;  %v687_v9 = vld [vmem:[%s854_s26 + $0x5c] sm:$0xf]  ;;  %382 = vmatpush.bf16.msra.mxu1 %v576_v57  ;;  %v652_v11 = vor.u32 %v698_v3, %v651_v2  ;;  %v656_v12 = vor.u32 %v694_v5, %v653_v6  ;;  %v628_v13 = vor.u32 %v691_v8, %v627_v7  ;;  %v619_v14 = vld [vmem:[%s854_s26 + $0x50] sm:$0xf]  ;;  %v686_v16 = vld [vmem:[%s854_s26 + $0x54] sm:$0xf] }
  0x3e   : > { %v629_v10 = vld [vmem:[%s854_s26 + $0x78] sm:$0xf0]  ;;  %395 = vmatpush.bf16.msra.mxu2 %v580_v58  ;;  %v690_v15 = vld [vmem:[%s854_s26 + $0x6c] sm:$0xf0]  ;;  %v621_v18 = vld [vmem:[%s854_s26 + $0x70] sm:$0xf0] }
  0x3f   : > { %408 = vmatpush.bf16.msra.mxu3 %v584_v62  ;;  %v632_v17 = vor.u32 %v687_v9, %v629_v10  ;;  %v595_v19 = vld [vmem:[%s854_s26 + $0x18] sm:$0xf]  ;;  %v679_v21 = vld [vmem:[%s854_s26 + $0x1c] sm:$0xf]  ;;  %v620_v23 = vor.u32 %v690_v15, %v619_v14  ;;  %v624_v24 = vor.u32 %v686_v16, %v621_v18  ;;  %v587_v26 = vld [vmem:[%s854_s26 + $0x10] sm:$0xf] }
  0x40   : > { %665 = vmatmul.msk.bf16.vlgmr.msra.gmra.mxu0 %vm358_vm0, %v213_v63  ;;  %v683_v20 = vld [vmem:[%s854_s26 + $0x34] sm:$0xf0]  ;;  %666 = vmatmul.msk.bf16.vlgmr.msra.gmra.mxu1 %vm358_vm0, %v213_v63  ;;  %v597_v22 = vld [vmem:[%s854_s26 + $0x38] sm:$0xf0]  ;;  %v682_v27 = vld [vmem:[%s854_s26 + $0x2c] sm:$0xf0] }
  0x41   : > { %667 = vmatmul.msk.bf16.vlgmr.msra.gmra.mxu2 %vm358_vm0, %v213_v63  ;;  %419 = vmatpush.bf16.msrb.mxu0 %v652_v11  ;;  %v596_v25 = vor.u32 %v683_v20, %v595_v19  ;;  %v600_v28 = vor.u32 %v679_v21, %v597_v22  ;;  %v678_v29 = vld [vmem:[%s854_s26 + $0x14] sm:$0xf]  ;;  %v588_v31 = vor.u32 %v682_v27, %v587_v26  ;;  %s568_s30 = sshll.u32 %s943_s29, 2 }
  0x42   : > { %445 = vmatpush.bf16.msrb.mxu2 %v660_v0  ;;  %668 = vmatmul.msk.bf16.vlgmr.msra.gmra.mxu3 %vm358_vm0, %v213_v63  ;;  %v589_v30 = vld [vmem:[%s854_s26 + $0x30] sm:$0xf0]  ;;  %s920_s5 = scalar_lea.vmem %s938_s2, %s568_s30 }
  0x43   : > { %458 = vmatpush.bf16.msrb.mxu3 %v664_v4  ;;  %432 = vmatpush.bf16.msrb.mxu1 %v656_v12  ;;  %v592_v32 = vor.u32 %v678_v29, %v589_v30 }
  0x45   : > { %420 = vmatpush.bf16.msrb.mxu0 %v620_v23 }
  0x46   : > { %446 = vmatpush.bf16.msrb.mxu2 %v628_v13 }
  0x47   : > { %459 = vmatpush.bf16.msrb.mxu3 %v632_v17  ;;  %433 = vmatpush.bf16.msrb.mxu1 %v624_v24 }
  0x49   : > { %421 = vmatpush.bf16.msrb.mxu0 %v588_v31 }
  0x4a   : > { %447 = vmatpush.bf16.msrb.mxu2 %v596_v25 }
  0x4b   : > { %460 = vmatpush.bf16.msrb.mxu3 %v600_v28  ;;  %434 = vmatpush.bf16.msrb.mxu1 %v592_v32 }
  0x50   : > { %669 = vmatmul.msk.bf16.vlgmr.msrb.gmra.mxu0 %vm358_vm0, %v213_v63  ;;  %670 = vmatmul.msk.bf16.vlgmr.msrb.gmra.mxu1 %vm358_vm0, %v213_v63 }
  0x51   : > { %671 = vmatmul.msk.bf16.vlgmr.msrb.gmra.mxu2 %vm358_vm0, %v213_v63 }
  0x52   : > { %672 = vmatmul.msk.bf16.vlgmr.msrb.gmra.mxu3 %vm358_vm0, %v213_v63 }
  0xbd   : > { %v371_v33 = vpop.f32.mrf.mxu0  ;;  %v384_v35 = vpop.f32.mrf.mxu1 }
  0xbe   : > { %vm466_vm1 = vcmp.ge.f32.partialorder %v371_v33, 0.0  ;;  %v474_v34 = vmul.f32 0.2, %v371_v33  ;;  %vm467_vm2 = vcmp.ge.f32.partialorder %v384_v35, 0.0  ;;  %v475_v36 = vmul.f32 0.2, %v384_v35 }
  0xc0   : > { %v482_v37 = vsel %vm466_vm1, %v371_v33, %v474_v34  ;;  %v483_v38 = vsel %vm467_vm2, %v384_v35, %v475_v36 }
  0xc1   : > { %v490_v39 = vpack.c.bf16 %v483_v38, %v482_v37 }
  0xc3   : > { %494 = vst [vmem:[%s920_s5] sm:$0xff] %v490_v39 }
  0xc4   : > { %v397_v40 = vpop.f32.mrf.mxu2 }
  0xc5   : > { %vm468_vm3 = vcmp.ge.f32.partialorder %v397_v40, 0.0  ;;  %v476_v41 = vmul.f32 0.2, %v397_v40  ;;  %v410_v42 = vpop.f32.mrf.mxu3  ;;  %v373_v43 = vpop.f32.mrf.mxu0 }
  0xc6   : > { %vm469_vm4 = vcmp.ge.f32.partialorder %v410_v42, 0.0  ;;  %v477_v44 = vmul.f32 0.2, %v410_v42  ;;  %v386_v45 = vpop.f32.mrf.mxu1 }
  0xc7   : > { %v484_v46 = vsel %vm468_vm3, %v397_v40, %v476_v41 }
  0xc8   : > { %v485_v47 = vsel %vm469_vm4, %v410_v42, %v477_v44 }
  0xc9   : > { %v491_v48 = vpack.c.bf16 %v485_v47, %v484_v46 }
  0xcb   : > { %495 = vst [vmem:[%s920_s5 + $0x8] sm:$0xff] %v491_v48 }
  0xcc   : > { %v399_v49 = vpop.f32.mrf.mxu2 }
  0xcd   : > { %v412_v50 = vpop.f32.mrf.mxu3  ;;  %v423_v51 = vpop.f32.mrf.mxu0 }
  0xce   : > { %vm470_vm5 = vcmp.ge.f32.partialorder %v423_v51, 0.0  ;;  %v478_v52 = vmul.f32 0.2, %v423_v51  ;;  %v436_v53 = vpop.f32.mrf.mxu1 }
  0xcf   : > { %vm471_vm6 = vcmp.ge.f32.partialorder %v436_v53, 0.0  ;;  %v479_v54 = vmul.f32 0.2, %v436_v53 }
  0xd0   : > { %v486_v55 = vsel %vm470_vm5, %v423_v51, %v478_v52 }
  0xd1   : > { %v487_v56 = vsel %vm471_vm6, %v436_v53, %v479_v54 }
  0xd2   : > { %v492_v57 = vpack.c.bf16 %v487_v56, %v486_v55 }
  0xd4   : > { %496 = vst [vmem:[%s920_s5 + $0x10] sm:$0xff] %v492_v57  ;;  %v449_v58 = vpop.f32.mrf.mxu2 }
  0xd5   : > { %vm472_vm7 = vcmp.ge.f32.partialorder %v449_v58, 0.0  ;;  %v480_v59 = vmul.f32 0.2, %v449_v58  ;;  %v462_v60 = vpop.f32.mrf.mxu3  ;;  %v425_v61 = vpop.f32.mrf.mxu0 }
  0xd6   : > { %vm473_vm8 = vcmp.ge.f32.partialorder %v462_v60, 0.0  ;;  %v481_v62 = vmul.f32 0.2, %v462_v60  ;;  %v438_v63 = vpop.f32.mrf.mxu1 }
  0xd7   : > { %v488_v0 = vsel %vm472_vm7, %v449_v58, %v480_v59 }
  0xd8   : > { %v489_v1 = vsel %vm473_vm8, %v462_v60, %v481_v62 }
  0xd9   : > { %v493_v2 = vpack.c.bf16 %v489_v1, %v488_v0 }
  0xdb   : > { %497 = vst [vmem:[%s920_s5 + $0x18] sm:$0xff] %v493_v2 }
  0xdc   : > { %v451_v3 = vpop.f32.mrf.mxu2 }
  0xdd   : > { %v464_v4 = vpop.f32.mrf.mxu3 }
  0xde PF: > { %p9_p9 = scmp.ge.s32.totalorder %s782_s13, 4   ;;  %s939_s9 = smov %s744_s10 }
  0xdf   : > { %s940_s10 = smov %s791_s16  ;;  %s941_s11 = smov %s782_s13 }
  0xe0   :  { %11 = sbr.rel (!%p9_p9) target bundleno = 2 (0x2), region = 86 }

// kernel: stage1d_forward.5
= control target key start
LH: loop header
LB: loop body
LE: loop exit
PB: predicated region body
PF: predicated region fallthrough
CT: control target
= control target key end

     0   :  { %s871_s1 = inlined_call_operand.vmem [shape: bf16[128,512], index: 1, kind: input, shape index: {}]   ;;  %s872_s0 = inlined_call_operand.vmem [shape: bf16[16,128], index: 0, kind: input, shape index: {}]   ;;  %s873_s3 = inlined_call_operand.vmem [shape: f32[16,1], index: 3, kind: input, shape index: {}]   ;;  %s874_s2 = inlined_call_operand.vmem [shape: f32[16,1], index: 2, kind: input, shape index: {}]   ;;  %s875_s4 = inlined_call_operand.vmem [shape: bf16[16,512], index: 4, kind: output, shape index: {}]  }
   0x1   :  { %v531_v0 = vld [vmem:[%s871_s1 + $0xe0] sm:$0xf]  ;;  %v576_v1 = vld [vmem:[%s871_s1 + $0xec] sm:$0xf0]  ;;  %v574_v2 = vld [vmem:[%s871_s1 + $0xe4] sm:$0xf] }
   0x2   :  { %v532_v3 = vor.u32 %v576_v1, %v531_v0  ;;  %v533_v4 = vld [vmem:[%s871_s1 + $0xf0] sm:$0xf0]  ;;  %v539_v5 = vld [vmem:[%s871_s1 + $0xe8] sm:$0xf]  ;;  %v577_v6 = vld [vmem:[%s871_s1 + $0xf4] sm:$0xf0] }
   0x3   :  { %v536_v7 = vor.u32 %v574_v2, %v533_v4  ;;  %v540_v8 = vor.u32 %v577_v6, %v539_v5  ;;  %v575_v9 = vld [vmem:[%s871_s1 + $0xec] sm:$0xf]  ;;  %v541_v10 = vld [vmem:[%s871_s1 + $0xf8] sm:$0xf0]  ;;  %v515_v11 = vld [vmem:[%s871_s1 + $0xc0] sm:$0xf] }
   0x4   :  { %217 = vmatpush.bf16.msra.mxu0 %v532_v3  ;;  %v544_v12 = vor.u32 %v575_v9, %v541_v10  ;;  %v572_v13 = vld [vmem:[%s871_s1 + $0xcc] sm:$0xf0]  ;;  %v570_v14 = vld [vmem:[%s871_s1 + $0xc4] sm:$0xf]  ;;  %v517_v15 = vld [vmem:[%s871_s1 + $0xd0] sm:$0xf0] }
   0x5   :  { %231 = vmatpush.bf16.msra.mxu1 %v536_v7  ;;  %245 = vmatpush.bf16.msra.mxu2 %v540_v8  ;;  %v516_v16 = vor.u32 %v572_v13, %v515_v11  ;;  %v520_v17 = vor.u32 %v570_v14, %v517_v15  ;;  %v523_v18 = vld [vmem:[%s871_s1 + $0xc8] sm:$0xf]  ;;  %v573_v19 = vld [vmem:[%s871_s1 + $0xd4] sm:$0xf0]  ;;  %v571_v20 = vld [vmem:[%s871_s1 + $0xcc] sm:$0xf] }
   0x6   :  { %259 = vmatpush.bf16.msra.mxu3 %v544_v12  ;;  %v524_v21 = vor.u32 %v573_v19, %v523_v18  ;;  %v525_v22 = vld [vmem:[%s871_s1 + $0xd8] sm:$0xf0]  ;;  %v499_v23 = vld [vmem:[%s871_s1 + $0xa0] sm:$0xf]  ;;  %v568_v24 = vld [vmem:[%s871_s1 + $0xac] sm:$0xf0] }
   0x7   :  { %v528_v25 = vor.u32 %v571_v20, %v525_v22  ;;  %v566_v26 = vld [vmem:[%s871_s1 + $0xa4] sm:$0xf]  ;;  %v501_v27 = vld [vmem:[%s871_s1 + $0xb0] sm:$0xf0]  ;;  %v507_v28 = vld [vmem:[%s871_s1 + $0xa8] sm:$0xf]  ;;  %v500_v29 = vor.u32 %v568_v24, %v499_v23 }
   0x8   :  { %218 = vmatpush.bf16.msra.mxu0 %v516_v16  ;;  %v569_v30 = vld [vmem:[%s871_s1 + $0xb4] sm:$0xf0]  ;;  %v567_v31 = vld [vmem:[%s871_s1 + $0xac] sm:$0xf]  ;;  %v509_v32 = vld [vmem:[%s871_s1 + $0xb8] sm:$0xf0]  ;;  %v504_v33 = vor.u32 %v566_v26, %v501_v27 }
   0x9   :  { %232 = vmatpush.bf16.msra.mxu1 %v520_v17  ;;  %246 = vmatpush.bf16.msra.mxu2 %v524_v21  ;;  %v508_v34 = vor.u32 %v569_v30, %v507_v28  ;;  %v483_v35 = vld [vmem:[%s871_s1 + $0x80] sm:$0xf]  ;;  %v564_v36 = vld [vmem:[%s871_s1 + $0x8c] sm:$0xf0]  ;;  %v562_v37 = vld [vmem:[%s871_s1 + $0x84] sm:$0xf]  ;;  %v512_v38 = vor.u32 %v567_v31, %v509_v32 }
   0xa   :  { %260 = vmatpush.bf16.msra.mxu3 %v528_v25  ;;  %v485_v39 = vld [vmem:[%s871_s1 + $0x90] sm:$0xf0]  ;;  %v491_v40 = vld [vmem:[%s871_s1 + $0x88] sm:$0xf]  ;;  %v565_v41 = vld [vmem:[%s871_s1 + $0x94] sm:$0xf0]  ;;  %v484_v44 = vor.u32 %v564_v36, %v483_v35 }
   0xb   :  { %v563_v42 = vld [vmem:[%s871_s1 + $0x8c] sm:$0xf]  ;;  %v493_v43 = vld [vmem:[%s871_s1 + $0x98] sm:$0xf0]  ;;  %v488_v45 = vor.u32 %v562_v37, %v485_v39  ;;  %v492_v46 = vor.u32 %v565_v41, %v491_v40  ;;  %v467_v47 = vld [vmem:[%s871_s1 + $0x60] sm:$0xf] }
   0xc   :  { %219 = vmatpush.bf16.msra.mxu0 %v500_v29  ;;  %v560_v48 = vld [vmem:[%s871_s1 + $0x6c] sm:$0xf0]  ;;  %v558_v49 = vld [vmem:[%s871_s1 + $0x64] sm:$0xf]  ;;  %v496_v50 = vor.u32 %v563_v42, %v493_v43  ;;  %v469_v51 = vld [vmem:[%s871_s1 + $0x70] sm:$0xf0] }
   0xd   :  { %233 = vmatpush.bf16.msra.mxu1 %v504_v33  ;;  %247 = vmatpush.bf16.msra.mxu2 %v508_v34  ;;  %v475_v52 = vld [vmem:[%s871_s1 + $0x68] sm:$0xf]  ;;  %v561_v53 = vld [vmem:[%s871_s1 + $0x74] sm:$0xf0]  ;;  %v559_v54 = vld [vmem:[%s871_s1 + $0x6c] sm:$0xf]  ;;  %v468_v56 = vor.u32 %v560_v48, %v467_v47  ;;  %v472_v57 = vor.u32 %v558_v49, %v469_v51 }
   0xe   :  { %261 = vmatpush.bf16.msra.mxu3 %v512_v38  ;;  %v477_v55 = vld [vmem:[%s871_s1 + $0x78] sm:$0xf0]  ;;  %v476_v58 = vor.u32 %v561_v53, %v475_v52  ;;  %v451_v59 = vld [vmem:[%s871_s1 + $0x40] sm:$0xf]  ;;  %v556_v60 = vld [vmem:[%s871_s1 + $0x4c] sm:$0xf0] }
   0xf   :  { %v554_v61 = vld [vmem:[%s871_s1 + $0x44] sm:$0xf]  ;;  %v480_v62 = vor.u32 %v559_v54, %v477_v55  ;;  %v453_v63 = vld [vmem:[%s871_s1 + $0x50] sm:$0xf0]  ;;  %v459_v0 = vld [vmem:[%s871_s1 + $0x48] sm:$0xf]  ;;  %v452_v4 = vor.u32 %v556_v60, %v451_v59 }
  0x10   :  { %220 = vmatpush.bf16.msra.mxu0 %v484_v44  ;;  %v557_v1 = vld [vmem:[%s871_s1 + $0x54] sm:$0xf0]  ;;  %v555_v2 = vld [vmem:[%s871_s1 + $0x4c] sm:$0xf]  ;;  %v461_v3 = vld [vmem:[%s871_s1 + $0x58] sm:$0xf0]  ;;  %v456_v5 = vor.u32 %v554_v61, %v453_v63 }
  0x11   :  { %234 = vmatpush.bf16.msra.mxu1 %v488_v45  ;;  %248 = vmatpush.bf16.msra.mxu2 %v492_v46  ;;  %v460_v6 = vor.u32 %v557_v1, %v459_v0  ;;  %v435_v7 = vld [vmem:[%s871_s1 + $0x20] sm:$0xf]  ;;  %v552_v8 = vld [vmem:[%s871_s1 + $0x2c] sm:$0xf0]  ;;  %v550_v9 = vld [vmem:[%s871_s1 + $0x24] sm:$0xf]  ;;  %v464_v10 = vor.u32 %v555_v2, %v461_v3 }
  0x12   :  { %262 = vmatpush.bf16.msra.mxu3 %v496_v50  ;;  %v437_v11 = vld [vmem:[%s871_s1 + $0x30] sm:$0xf0]  ;;  %v443_v12 = vld [vmem:[%s871_s1 + $0x28] sm:$0xf]  ;;  %v553_v13 = vld [vmem:[%s871_s1 + $0x34] sm:$0xf0]  ;;  %v436_v16 = vor.u32 %v552_v8, %v435_v7 }
  0x13   :  { %v551_v14 = vld [vmem:[%s871_s1 + $0x2c] sm:$0xf]  ;;  %v445_v15 = vld [vmem:[%s871_s1 + $0x38] sm:$0xf0]  ;;  %v440_v17 = vor.u32 %v550_v9, %v437_v11  ;;  %v444_v18 = vor.u32 %v553_v13, %v443_v12  ;;  %v419_v19 = vld [vmem:[%s871_s1] sm:$0xf] }
  0x14   :  { %221 = vmatpush.bf16.msra.mxu0 %v468_v56  ;;  %v548_v20 = vld [vmem:[%s871_s1 + $0xc] sm:$0xf0]  ;;  %v546_v21 = vld [vmem:[%s871_s1 + $0x4] sm:$0xf]  ;;  %v448_v22 = vor.u32 %v551_v14, %v445_v15  ;;  %v421_v23 = vld [vmem:[%s871_s1 + $0x10] sm:$0xf0] }
  0x15   :  { %235 = vmatpush.bf16.msra.mxu1 %v472_v57  ;;  %249 = vmatpush.bf16.msra.mxu2 %v476_v58  ;;  %v427_v24 = vld [vmem:[%s871_s1 + $0x8] sm:$0xf]  ;;  %v549_v25 = vld [vmem:[%s871_s1 + $0x14] sm:$0xf0]  ;;  %v547_v26 = vld [vmem:[%s871_s1 + $0xc] sm:$0xf]  ;;  %v420_v28 = vor.u32 %v548_v20, %v419_v19  ;;  %v424_v29 = vor.u32 %v546_v21, %v421_v23 }
  0x16   :  { %263 = vmatpush.bf16.msra.mxu3 %v480_v62  ;;  %v429_v27 = vld [vmem:[%s871_s1 + $0x18] sm:$0xf0]  ;;  %v428_v30 = vor.u32 %v549_v25, %v427_v24  ;;  %v545_v32 = vld [vmem:[%s872_s0] sm:$0xff]  ;;  %v586_v9 = vmov 0   ;;  %v358_v11 = vld [vmem:[%s873_s3 + $0x8] sm:$0xff] }
  0x17   :  { %v432_v31 = vor.u32 %v547_v26, %v429_v27  ;;  %580 = vset.pattern.permute.xlu0 %v586_v9  ;;  %581 = vset.pattern.permute.xlu1 %v586_v9  ;;  %v335_v26 = vld [vmem:[%s874_s2] sm:$0xff] }
  0x18   :  { %222 = vmatpush.bf16.msra.mxu0 %v452_v4  ;;  %579 = vset.pattern.permute.xlu2 %v586_v9 }
  0x19   :  { %236 = vmatpush.bf16.msra.mxu1 %v456_v5  ;;  %250 = vmatpush.bf16.msra.mxu2 %v460_v6 }
  0x1a   :  { %264 = vmatpush.bf16.msra.mxu3 %v464_v10  ;;  %v357_v10 = vld [vmem:[%s873_s3] sm:$0xff] }
  0x1c   :  { %223 = vmatpush.bf16.msra.mxu0 %v436_v16 }
  0x1d   :  { %237 = vmatpush.bf16.msra.mxu1 %v440_v17  ;;  %251 = vmatpush.bf16.msra.mxu2 %v444_v18 }
  0x1e   :  { %265 = vmatpush.bf16.msra.mxu3 %v448_v22 }
  0x20   :  { %224 = vmatpush.bf16.msra.mxu0 %v420_v28 }
  0x21   :  { %238 = vmatpush.bf16.msra.mxu1 %v424_v29  ;;  %252 = vmatpush.bf16.msra.mxu2 %v428_v30 }
  0x22   :  { %266 = vmatpush.bf16.msra.mxu3 %v432_v31 }
  0x23   :  { %225 = vmatmul.bf16.vlgmr.msra.gmra.mxu0 %v545_v32 }
  0x24   :  { %239 = vmatmul.bf16.vlgmr.msra.gmra.mxu1 %v545_v32  ;;  %253 = vmatmul.bf16.vlgmr.msra.gmra.mxu2 %v545_v32 }
  0x25   :  { %267 = vmatmul.bf16.vlgmr.msra.gmra.mxu3 %v545_v32  ;;  %v336_v32 = vld [vmem:[%s874_s2 + $0x8] sm:$0xff] }
  0xa0   :  { %v226_v33 = vpop.f32.mrf.mxu0 }
  0xa1   :  { %v240_v34 = vpop.f32.mrf.mxu1 }
  0xa2   :  { %v273_v35 = vadd.f32 %v240_v34, %v226_v33 }
  0xa7   :  { %v254_v36 = vpop.f32.mrf.mxu2 }
  0xa8   :  { %v274_v37 = vadd.f32 %v273_v35, %v254_v36  ;;  %v268_v38 = vpop.f32.mrf.mxu3  ;;  %v228_v40 = vpop.f32.mrf.mxu0 }
  0xa9   :  { %v242_v41 = vpop.f32.mrf.mxu1 }
  0xaa   :  { %v275_v39 = vadd.f32 %v274_v37, %v268_v38  ;;  %v278_v42 = vadd.f32 %v242_v41, %v228_v40 }
  0xac   :  { %276 = vadd.xlane.f32.xlu0 %v275_v39 }
  0xaf   :  { %v256_v43 = vpop.f32.mrf.mxu2 }
  0xb0   :  { %v279_v44 = vadd.f32 %v278_v42, %v256_v43  ;;  %v270_v45 = vpop.f32.mrf.mxu3 }
  0xb2   :  { %v280_v46 = vadd.f32 %v279_v44, %v270_v45 }
  0xb4   :  { %281 = vadd.xlane.f32.xlu0 %v280_v46 }
  0xc8   :  { %361 = vperm.xlu0 %580, %v357_v10  }
 0x11f   :  { %v277_v47 = vpop.xlane.xlu0 %276 }
 0x120   :  { %v283_v48 = vmul.f32 0.001953125, %v277_v47 }
 0x122   :  { %v807_v49 = vsub.f32 %v226_v33, %v283_v48  ;;  %v809_v50 = vsub.f32 %v240_v34, %v283_v48  ;;  %v811_v51 = vsub.f32 %v254_v36, %v283_v48  ;;  %v813_v52 = vsub.f32 %v268_v38, %v283_v48 }
 0x124   :  { %v293_v53 = vmul.f32 %v807_v49, %v807_v49  ;;  %v294_v54 = vmul.f32 %v809_v50, %v809_v50  ;;  %v295_v55 = vmul.f32 %v811_v51, %v811_v51  ;;  %v296_v59 = vmul.f32 %v813_v52, %v813_v52 }
 0x126   :  { %v301_v56 = vadd.f32 %v294_v54, %v293_v53 }
 0x127   :  { %v282_v57 = vpop.xlane.xlu0 %281 }
 0x128   :  { %v284_v58 = vmul.f32 0.001953125, %v282_v57  ;;  %v302_v60 = vadd.f32 %v301_v56, %v295_v55 }
 0x12a   :  { %v823_v61 = vsub.f32 %v228_v40, %v284_v58  ;;  %v825_v62 = vsub.f32 %v242_v41, %v284_v58  ;;  %v303_v63 = vadd.f32 %v302_v60, %v296_v59  ;;  %v827_v0 = vsub.f32 %v256_v43, %v284_v58 }
 0x12b   :  { %v829_v1 = vsub.f32 %v270_v45, %v284_v58 }
 0x12c   :  { %304 = vadd.xlane.f32.xlu1 %v303_v63  ;;  %v297_v2 = vmul.f32 %v823_v61, %v823_v61  ;;  %v298_v3 = vmul.f32 %v825_v62, %v825_v62  ;;  %v299_v4 = vmul.f32 %v827_v0, %v827_v0 }
 0x12d   :  { %v300_v6 = vmul.f32 %v829_v1, %v829_v1 }
 0x12e   :  { %v306_v5 = vadd.f32 %v298_v3, %v297_v2 }
 0x130   :  { %v307_v7 = vadd.f32 %v306_v5, %v299_v4 }
 0x132   :  { %v308_v8 = vadd.f32 %v307_v7, %v300_v6 }
 0x134   :  { %309 = vadd.xlane.f32.xlu1 %v308_v8 }
 0x13a   :  { %v362_v37 = vpop.permute.xlu0 %361 }
 0x14d   :  { %366 = vperm.xlu1 %581, %v358_v11  }
 0x19f   :  { %v305_v12 = vpop.xlane.xlu1 %304 }
 0x1a0   :  { %v311_v13 = vmul.f32 0.001953125, %v305_v12 }
 0x1a2   :  { %v313_v14 = vadd.f32 1e-05, %v311_v13 }
 0x1a4   :  { %582 = vrsqrt.f32 %v313_v14  ;;  %vm321_vm1 = vweird.f32 %v313_v14 }
 0x1a7   :  { %v310_v15 = vpop.xlane.xlu1 %309 }
 0x1a8   :  { %v312_v16 = vmul.f32 0.001953125, %v310_v15 }
 0x1aa   :  { %v583_v17 = vpop.eup %582  ;;  %v314_v18 = vadd.f32 1e-05, %v312_v16 }
 0x1ab   :  { %v316_v19 = vmul.f32 %v583_v17, %v313_v14  ;;  %vm322_vm0 = vweird.f32 %v583_v17 }
 0x1ac   :  { %584 = vrsqrt.f32 %v314_v18  ;;  %vm323_vm2 = vmor %vm321_vm1, %vm322_vm0  ;;  %vm331_vm4 = vweird.f32 %v314_v18 }
 0x1ad   :  { %v317_v20 = vmul.f32 %v583_v17, %v316_v19 }
 0x1af   :  { %v318_v21 = vmul.f32 0.5, %v317_v20 }
 0x1b1   :  { %v319_v22 = vsub.f32 1.5, %v318_v21 }
 0x1b2   :  { %v585_v23 = vpop.eup %584 }
 0x1b3   :  { %v326_v24 = vmul.f32 %v585_v23, %v314_v18  ;;  %v320_v25 = vmul.f32 %v583_v17, %v319_v22  ;;  %vm332_vm3 = vweird.f32 %v585_v23 }
 0x1b4   :  { %vm333_vm5 = vmor %vm331_vm4, %vm332_vm3 }
 0x1b5   :  { %v327_v27 = vmul.f32 %v585_v23, %v326_v24  ;;  %v324_v28 = vsel %vm323_vm2, %v583_v17, %v320_v25 }
 0x1b6   :  { %v337_v29 = vmul.f32 %v335_v26, %v324_v28 }
 0x1b7   :  { %v328_v30 = vmul.f32 0.5, %v327_v27 }
 0x1b8   :  { %341 = vperm.xlu2 %579, %v337_v29  }
 0x1b9   :  { %v329_v31 = vsub.f32 1.5, %v328_v30 }
 0x1bb   :  { %v330_v33 = vmul.f32 %v585_v23, %v329_v31 }
 0x1bd   :  { %v334_v34 = vsel %vm333_vm5, %v585_v23, %v330_v33 }
 0x1be   :  { %v338_v35 = vmul.f32 %v336_v32, %v334_v34 }
 0x1bf   :  { %v367_v56 = vpop.permute.xlu1 %366 }
 0x1c0   :  { %346 = vperm.xlu2 %579, %v338_v35  }
 0x212   :  { %v342_v36 = vpop.permute.xlu2 %341 }
 0x213   :  { %v349_v38 = vmul.f32 %v342_v36, %v807_v49  ;;  %v350_v39 = vmul.f32 %v342_v36, %v809_v50  ;;  %v351_v40 = vmul.f32 %v342_v36, %v811_v51  ;;  %v352_v41 = vmul.f32 %v342_v36, %v813_v52 }
 0x215   :  { %v369_v42 = vadd.f32 %v362_v37, %v349_v38  ;;  %v370_v43 = vadd.f32 %v362_v37, %v350_v39  ;;  %v371_v44 = vadd.f32 %v362_v37, %v351_v40  ;;  %v372_v45 = vadd.f32 %v362_v37, %v352_v41 }
 0x217   :  { %vm377_vm6 = vcmp.ge.f32.partialorder %v369_v42, 0.0  ;;  %vm378_vm7 = vcmp.ge.f32.partialorder %v370_v43, 0.0  ;;  %vm379_vm8 = vcmp.ge.f32.partialorder %v371_v44, 0.0  ;;  %vm380_vm9 = vcmp.ge.f32.partialorder %v372_v45, 0.0 }
 0x218   :  { %v385_v46 = vmul.f32 0.2, %v369_v42  ;;  %v386_v47 = vmul.f32 0.2, %v370_v43  ;;  %v387_v48 = vmul.f32 0.2, %v371_v44 }
 0x219   :  { %v388_v53 = vmul.f32 0.2, %v372_v45 }
 0x21a   :  { %v393_v54 = vsel %vm377_vm6, %v369_v42, %v385_v46  ;;  %v394_v49 = vsel %vm378_vm7, %v370_v43, %v386_v47  ;;  %v395_v55 = vsel %vm379_vm8, %v371_v44, %v387_v48  ;;  %v347_v50 = vpop.permute.xlu2 %346 }
 0x21b   :  { %v396_v51 = vsel %vm380_vm9, %v372_v45, %v388_v53  ;;  %v401_v57 = vpack.c.bf16 %v394_v49, %v393_v54  ;;  %v353_v52 = vmul.f32 %v347_v50, %v823_v61  ;;  %v354_v58 = vmul.f32 %v347_v50, %v825_v62 }
 0x21c   :  { %v402_v59 = vpack.c.bf16 %v396_v51, %v395_v55  ;;  %v355_v60 = vmul.f32 %v347_v50, %v827_v0  ;;  %v356_v63 = vmul.f32 %v347_v50, %v829_v1 }
 0x21d   :  { %405 = vst [vmem:[%s875_s4] sm:$0xff] %v401_v57  ;;  %v373_v2 = vadd.f32 %v367_v56, %v353_v52  ;;  %v374_v3 = vadd.f32 %v367_v56, %v354_v58 }
 0x21e   :  { %406 = vst [vmem:[%s875_s4 + $0x8] sm:$0xff] %v402_v59  ;;  %v375_v4 = vadd.f32 %v367_v56, %v355_v60  ;;  %v376_v5 = vadd.f32 %v367_v56, %v356_v63 }
 0x21f   :  { %vm381_vm10 = vcmp.ge.f32.partialorder %v373_v2, 0.0  ;;  %vm382_vm11 = vcmp.ge.f32.partialorder %v374_v3, 0.0  ;;  %v389_v61 = vmul.f32 0.2, %v373_v2  ;;  %v390_v62 = vmul.f32 0.2, %v374_v3 }
 0x220   :  { %vm383_vm12 = vcmp.ge.f32.partialorder %v375_v4, 0.0  ;;  %vm384_vm13 = vcmp.ge.f32.partialorder %v376_v5, 0.0  ;;  %v391_v0 = vmul.f32 0.2, %v375_v4  ;;  %v392_v1 = vmul.f32 0.2, %v376_v5 }
 0x221   :  { %v397_v6 = vsel %vm381_vm10, %v373_v2, %v389_v61  ;;  %v398_v7 = vsel %vm382_vm11, %v374_v3, %v390_v62 }
 0x222   :  { %v399_v8 = vsel %vm383_vm12, %v375_v4, %v391_v0  ;;  %v400_v9 = vsel %vm384_vm13, %v376_v5, %v392_v1  ;;  %v403_v10 = vpack.c.bf16 %v398_v7, %v397_v6 }
 0x223   :  { %v404_v11 = vpack.c.bf16 %v400_v9, %v399_v8 }
 0x224   :  { %407 = vst [vmem:[%s875_s4 + $0x10] sm:$0xff] %v403_v10 }
 0x225   :  { %408 = vst [vmem:[%s875_s4 + $0x18] sm:$0xff] %v404_v11 }

// kernel: stage1d_forward.6
= control target key start
LH: loop header
LB: loop body
LE: loop exit
PB: predicated region body
PF: predicated region fallthrough
CT: control target
= control target key end

     0   :  { %v506_v56 = vmov 0   ;;  %s654_s1 = inlined_call_operand.vmem [shape: bf16[256,128], index: 1, kind: input, shape index: {}]   ;;  %s655_s0 = inlined_call_operand.vmem [shape: bf16[32,256], index: 0, kind: input, shape index: {}]   ;;  %s656_s2 = inlined_call_operand.vmem [shape: f32[32,1], index: 2, kind: input, shape index: {}]   ;;  %s657_s3 = inlined_call_operand.vmem [shape: f32[32,1], index: 3, kind: input, shape index: {}]   ;;  %s658_s4 = inlined_call_operand.vmem [shape: bf16[32,128], index: 4, kind: output, shape index: {}]  }
   0x1   :  { %v458_v0 = vld [vmem:[%s654_s1 + $0x38] sm:$0xff]  ;;  %v457_v2 = vld [vmem:[%s654_s1 + $0x30] sm:$0xff]  ;;  %v456_v4 = vld [vmem:[%s654_s1 + $0x28] sm:$0xff]  ;;  %495 = vset.pattern.permute.xlu2 %v506_v56  ;;  %497 = vset.pattern.permute.xlu1 %v506_v56 }
   0x2   :  { %v466_v1 = vld [vmem:[%s654_s1 + $0x78] sm:$0xff]  ;;  %169 = vmatpush.bf16.msra.mxu0 %v458_v0  ;;  %478 = vmatpush.bf16.msra.mxu2 %v458_v0  ;;  %v465_v3 = vld [vmem:[%s654_s1 + $0x70] sm:$0xff]  ;;  %v464_v5 = vld [vmem:[%s654_s1 + $0x68] sm:$0xff] }
   0x3   :  { %188 = vmatpush.bf16.msra.mxu1 %v466_v1  ;;  %486 = vmatpush.bf16.msra.mxu3 %v466_v1  ;;  %v455_v6 = vld [vmem:[%s654_s1 + $0x20] sm:$0xff]  ;;  %v454_v8 = vld [vmem:[%s654_s1 + $0x18] sm:$0xff]  ;;  %v453_v10 = vld [vmem:[%s654_s1 + $0x10] sm:$0xff] }
   0x4   :  { %v463_v7 = vld [vmem:[%s654_s1 + $0x60] sm:$0xff]  ;;  %v462_v9 = vld [vmem:[%s654_s1 + $0x58] sm:$0xff]  ;;  %v461_v11 = vld [vmem:[%s654_s1 + $0x50] sm:$0xff]  ;;  %496 = vset.pattern.permute.xlu0 %v506_v56 }
   0x5   :  { %v452_v12 = vld [vmem:[%s654_s1 + $0x8] sm:$0xff]  ;;  %v451_v14 = vld [vmem:[%s654_s1] sm:$0xff]  ;;  %v377_v18 = vld [vmem:[%s655_s0 + $0x10] sm:$0xf] }
   0x6   :  { %170 = vmatpush.bf16.msra.mxu0 %v457_v2  ;;  %479 = vmatpush.bf16.msra.mxu2 %v457_v2  ;;  %v460_v13 = vld [vmem:[%s654_s1 + $0x48] sm:$0xff]  ;;  %v459_v15 = vld [vmem:[%s654_s1 + $0x40] sm:$0xff]  ;;  %v450_v19 = vld [vmem:[%s655_s0 + $0x14] sm:$0xf0] }
   0x7   :  { %189 = vmatpush.bf16.msra.mxu1 %v465_v3  ;;  %487 = vmatpush.bf16.msra.mxu3 %v465_v3  ;;  %v369_v16 = vld [vmem:[%s655_s0] sm:$0xf]  ;;  %v448_v17 = vld [vmem:[%s655_s0 + $0x4] sm:$0xf0]  ;;  %v447_v20 = vld [vmem:[%s655_s0 + $0x4] sm:$0xf]  ;;  %v378_v25 = vor.u32 %v450_v19, %v377_v18 }
   0x8   :  { %v371_v21 = vld [vmem:[%s655_s0 + $0x8] sm:$0xf0]  ;;  %v449_v22 = vld [vmem:[%s655_s0 + $0x14] sm:$0xf]  ;;  %v379_v23 = vld [vmem:[%s655_s0 + $0x18] sm:$0xf0]  ;;  %v370_v24 = vor.u32 %v448_v17, %v369_v16 }
   0x9   :  { %v374_v26 = vor.u32 %v447_v20, %v371_v21  ;;  %v382_v27 = vor.u32 %v449_v22, %v379_v23  ;;  %v283_v16 = vld [vmem:[%s656_s2] sm:$0xff] }
   0xa   :  { %171 = vmatpush.bf16.msra.mxu0 %v456_v4  ;;  %480 = vmatpush.bf16.msra.mxu2 %v456_v4 }
   0xb   :  { %190 = vmatpush.bf16.msra.mxu1 %v464_v5  ;;  %488 = vmatpush.bf16.msra.mxu3 %v464_v5 }
   0xe   :  { %172 = vmatpush.bf16.msra.mxu0 %v455_v6  ;;  %481 = vmatpush.bf16.msra.mxu2 %v455_v6 }
   0xf   :  { %191 = vmatpush.bf16.msra.mxu1 %v463_v7  ;;  %489 = vmatpush.bf16.msra.mxu3 %v463_v7 }
  0x12   :  { %173 = vmatpush.bf16.msra.mxu0 %v454_v8  ;;  %482 = vmatpush.bf16.msra.mxu2 %v454_v8 }
  0x13   :  { %192 = vmatpush.bf16.msra.mxu1 %v462_v9  ;;  %490 = vmatpush.bf16.msra.mxu3 %v462_v9 }
  0x16   :  { %174 = vmatpush.bf16.msra.mxu0 %v453_v10  ;;  %483 = vmatpush.bf16.msra.mxu2 %v453_v10 }
  0x17   :  { %193 = vmatpush.bf16.msra.mxu1 %v461_v11  ;;  %491 = vmatpush.bf16.msra.mxu3 %v461_v11 }
  0x1a   :  { %175 = vmatpush.bf16.msra.mxu0 %v452_v12  ;;  %484 = vmatpush.bf16.msra.mxu2 %v452_v12 }
  0x1b   :  { %194 = vmatpush.bf16.msra.mxu1 %v460_v13  ;;  %492 = vmatpush.bf16.msra.mxu3 %v460_v13 }
  0x1e   :  { %176 = vmatpush.bf16.msra.mxu0 %v451_v14  ;;  %485 = vmatpush.bf16.msra.mxu2 %v451_v14 }
  0x1f   :  { %195 = vmatpush.bf16.msra.mxu1 %v459_v15  ;;  %493 = vmatpush.bf16.msra.mxu3 %v459_v15 }
  0x21   :  { %177 = vmatmul.bf16.vlgmr.msra.gmra.mxu0 %v370_v24  ;;  %182 = vmatmul.bf16.vlgmr.msra.gmra.mxu2 %v378_v25 }
  0x22   :  { %196 = vmatmul.bf16.vlgmr.msra.gmra.mxu1 %v374_v26  ;;  %201 = vmatmul.bf16.vlgmr.msra.gmra.mxu3 %v382_v27  ;;  %v285_v27 = vld [vmem:[%s656_s2 + $0x10] sm:$0xff] }
  0x9e   :  { %v178_v28 = vpop.f32.mrf.mxu0 }
  0x9f   :  { %v197_v29 = vpop.f32.mrf.mxu1 }
  0xa0   :  { %v198_v30 = vadd.f32 %v197_v29, %v178_v28 }
  0xa2   :  { %207 = vadd.xlane.f32.xlu0 %v198_v30 }
  0xa4   :  { %v183_v31 = vpop.f32.mrf.mxu2 }
  0xa5   :  { %v202_v32 = vpop.f32.mrf.mxu3 }
  0xa6   :  { %v203_v33 = vadd.f32 %v202_v32, %v183_v31  ;;  %v180_v34 = vpop.f32.mrf.mxu0  ;;  %v284_v31 = vld [vmem:[%s656_s2 + $0x8] sm:$0xff] }
  0xa7   :  { %v199_v35 = vpop.f32.mrf.mxu1 }
  0xa8   :  { %v200_v36 = vadd.f32 %v199_v35, %v180_v34  ;;  %211 = vadd.xlane.f32.xlu1 %v203_v33  ;;  %v315_v34 = vld [vmem:[%s657_s3] sm:$0xff] }
  0xaa   :  { %209 = vadd.xlane.f32.xlu0 %v200_v36 }
  0xac   :  { %v185_v37 = vpop.f32.mrf.mxu2 }
  0xad   :  { %v204_v38 = vpop.f32.mrf.mxu3 }
  0xae   :  { %v205_v39 = vadd.f32 %v204_v38, %v185_v37 }
  0xb0   :  { %213 = vadd.xlane.f32.xlu1 %v205_v39 }
 0x115   :  { %v208_v40 = vpop.xlane.xlu0 %207 }
 0x116   :  { %v215_v41 = vmul.f32 0.0078125, %v208_v40 }
 0x118   :  { %v604_v42 = vsub.f32 %v198_v30, %v215_v41  ;;  %v286_v41 = vld [vmem:[%s656_s2 + $0x18] sm:$0xff] }
 0x11a   :  { %v223_v43 = vmul.f32 %v604_v42, %v604_v42 }
 0x11b   :  { %v212_v44 = vpop.xlane.xlu1 %211 }
 0x11c   :  { %v217_v45 = vmul.f32 0.0078125, %v212_v44  ;;  %227 = vadd.xlane.f32.xlu2 %v223_v43  ;;  %v318_v44 = vld [vmem:[%s657_s3 + $0x18] sm:$0xff] }
 0x11d   :  { %v210_v46 = vpop.xlane.xlu0 %209 }
 0x11e   :  { %v608_v47 = vsub.f32 %v203_v33, %v217_v45  ;;  %v216_v48 = vmul.f32 0.0078125, %v210_v46  ;;  %v317_v45 = vld [vmem:[%s657_s3 + $0x10] sm:$0xff] }
 0x120   :  { %v610_v49 = vsub.f32 %v200_v36, %v216_v48  ;;  %v225_v50 = vmul.f32 %v608_v47, %v608_v47 }
 0x122   :  { %231 = vadd.xlane.f32.xlu0 %v225_v50  ;;  %v224_v51 = vmul.f32 %v610_v49, %v610_v49 }
 0x123   :  { %v214_v52 = vpop.xlane.xlu1 %213 }
 0x124   :  { %v218_v53 = vmul.f32 0.0078125, %v214_v52  ;;  %229 = vadd.xlane.f32.xlu2 %v224_v51 }
 0x126   :  { %v616_v54 = vsub.f32 %v205_v39, %v218_v53  ;;  %v316_v39 = vld [vmem:[%s657_s3 + $0x8] sm:$0xff] }
 0x128   :  { %v226_v55 = vmul.f32 %v616_v54, %v616_v54 }
 0x12a   :  { %233 = vadd.xlane.f32.xlu1 %v226_v55 }
 0x18f   :  { %v228_v57 = vpop.xlane.xlu2 %227 }
 0x190   :  { %v235_v58 = vmul.f32 0.0078125, %v228_v57 }
 0x192   :  { %v239_v59 = vadd.f32 1e-05, %v235_v58 }
 0x194   :  { %498 = vrsqrt.f32 %v239_v59  ;;  %vm249_vm1 = vweird.f32 %v239_v59 }
 0x195   :  { %v232_v60 = vpop.xlane.xlu0 %231 }
 0x196   :  { %v237_v61 = vmul.f32 0.0078125, %v232_v60 }
 0x197   :  { %v230_v62 = vpop.xlane.xlu2 %229 }
 0x198   :  { %v241_v63 = vadd.f32 1e-05, %v237_v61  ;;  %v236_v0 = vmul.f32 0.0078125, %v230_v62 }
 0x19a   :  { %v499_v1 = vpop.eup %498  ;;  %500 = vrsqrt.f32 %v241_v63  ;;  %v240_v2 = vadd.f32 1e-05, %v236_v0  ;;  %vm269_vm4 = vweird.f32 %v241_v63 }
 0x19b   :  { %v244_v3 = vmul.f32 %v499_v1, %v239_v59  ;;  %vm250_vm0 = vweird.f32 %v499_v1 }
 0x19c   :  { %502 = vrsqrt.f32 %v240_v2  ;;  %vm251_vm2 = vmor %vm249_vm1, %vm250_vm0  ;;  %vm259_vm7 = vweird.f32 %v240_v2 }
 0x19d   :  { %v245_v4 = vmul.f32 %v499_v1, %v244_v3  ;;  %v234_v5 = vpop.xlane.xlu1 %233 }
 0x19e   :  { %v238_v6 = vmul.f32 0.0078125, %v234_v5 }
 0x19f   :  { %v246_v7 = vmul.f32 0.5, %v245_v4 }
 0x1a0   :  { %v501_v8 = vpop.eup %500  ;;  %v242_v9 = vadd.f32 1e-05, %v238_v6 }
 0x1a1   :  { %v247_v10 = vsub.f32 1.5, %v246_v7  ;;  %v264_v11 = vmul.f32 %v501_v8, %v241_v63  ;;  %vm270_vm3 = vweird.f32 %v501_v8 }
 0x1a2   :  { %v503_v12 = vpop.eup %502  ;;  %504 = vrsqrt.f32 %v242_v9  ;;  %vm271_vm6 = vmor %vm269_vm4, %vm270_vm3  ;;  %vm279_vm10 = vweird.f32 %v242_v9 }
 0x1a3   :  { %v265_v13 = vmul.f32 %v501_v8, %v264_v11  ;;  %v254_v14 = vmul.f32 %v503_v12, %v240_v2  ;;  %v248_v15 = vmul.f32 %v499_v1, %v247_v10  ;;  %vm260_vm5 = vweird.f32 %v503_v12 }
 0x1a4   :  { %vm261_vm8 = vmor %vm259_vm7, %vm260_vm5 }
 0x1a5   :  { %v266_v17 = vmul.f32 0.5, %v265_v13  ;;  %v255_v18 = vmul.f32 %v503_v12, %v254_v14  ;;  %v252_v19 = vsel %vm251_vm2, %v499_v1, %v248_v15 }
 0x1a6   :  { %v287_v20 = vmul.f32 %v283_v16, %v252_v19 }
 0x1a7   :  { %v267_v21 = vsub.f32 1.5, %v266_v17  ;;  %v256_v22 = vmul.f32 0.5, %v255_v18 }
 0x1a8   :  { %v505_v23 = vpop.eup %504  ;;  %293 = vperm.xlu2 %495, %v287_v20  }
 0x1a9   :  { %v257_v24 = vsub.f32 1.5, %v256_v22  ;;  %v274_v25 = vmul.f32 %v505_v23, %v242_v9  ;;  %v268_v26 = vmul.f32 %v501_v8, %v267_v21  ;;  %vm280_vm9 = vweird.f32 %v505_v23 }
 0x1aa   :  { %vm281_vm11 = vmor %vm279_vm10, %vm280_vm9 }
 0x1ab   :  { %v275_v28 = vmul.f32 %v505_v23, %v274_v25  ;;  %v272_v29 = vsel %vm271_vm6, %v501_v8, %v268_v26  ;;  %v258_v30 = vmul.f32 %v503_v12, %v257_v24 }
 0x1ac   :  { %v289_v32 = vmul.f32 %v285_v27, %v272_v29 }
 0x1ad   :  { %v276_v33 = vmul.f32 0.5, %v275_v28  ;;  %v262_v35 = vsel %vm261_vm8, %v503_v12, %v258_v30 }
 0x1ae   :  { %303 = vperm.xlu1 %497, %v289_v32   ;;  %v288_v36 = vmul.f32 %v284_v31, %v262_v35 }
 0x1af   :  { %v277_v37 = vsub.f32 1.5, %v276_v33 }
 0x1b0   :  { %321 = vperm.xlu2 %495, %v315_v34   ;;  %298 = vperm.xlu0 %496, %v288_v36  }
 0x1b1   :  { %v278_v38 = vmul.f32 %v505_v23, %v277_v37 }
 0x1b3   :  { %v282_v40 = vsel %vm281_vm11, %v505_v23, %v278_v38 }
 0x1b4   :  { %v290_v43 = vmul.f32 %v286_v41, %v282_v40 }
 0x1b6   :  { %326 = vperm.xlu1 %497, %v316_v39  }
 0x1b8   :  { %308 = vperm.xlu2 %495, %v290_v43  }
 0x1be   :  { %336 = vperm.xlu1 %497, %v318_v44  }
 0x1c0   :  { %331 = vperm.xlu2 %495, %v317_v45  }
 0x202   :  { %v294_v46 = vpop.permute.xlu2 %293 }
 0x203   :  { %v311_v52 = vmul.f32 %v294_v46, %v604_v42 }
 0x20a   :  { %v322_v48 = vpop.permute.xlu2 %321 }
 0x20b   :  { %v339_v55 = vadd.f32 %v322_v48, %v311_v52 }
 0x20d   :  { %v347_v58 = vmul.f32 0.2, %v339_v55  ;;  %vm343_vm12 = vcmp.ge.f32.partialorder %v339_v55, 0.0 }
 0x20f   :  { %v351_v63 = vsel %vm343_vm12, %v339_v55, %v347_v58 }
 0x212   :  { %v309_v51 = vpop.permute.xlu2 %308 }
 0x213   :  { %v314_v3 = vmul.f32 %v309_v51, %v616_v54 }
 0x21a   :  { %v332_v62 = vpop.permute.xlu2 %331 }
 0x220   :  { %v304_v50 = vpop.permute.xlu1 %303 }
 0x221   :  { %v313_v59 = vmul.f32 %v304_v50, %v608_v47 }
 0x222   :  { %v299_v53 = vpop.permute.xlu0 %298 }
 0x223   :  { %v312_v56 = vmul.f32 %v299_v53, %v610_v49  ;;  %v341_v0 = vadd.f32 %v332_v62, %v313_v59 }
 0x225   :  { %v349_v49 = vmul.f32 0.2, %v341_v0  ;;  %vm345_vm14 = vcmp.ge.f32.partialorder %v341_v0, 0.0 }
 0x227   :  { %v353_v5 = vsel %vm345_vm14, %v341_v0, %v349_v49 }
 0x228   :  { %v327_v57 = vpop.permute.xlu1 %326 }
 0x229   :  { %v340_v60 = vadd.f32 %v327_v57, %v312_v56 }
 0x22b   :  { %vm344_vm13 = vcmp.ge.f32.partialorder %v340_v60, 0.0  ;;  %v348_v61 = vmul.f32 0.2, %v340_v60 }
 0x22d   :  { %v352_v1 = vsel %vm344_vm13, %v340_v60, %v348_v61 }
 0x22e   :  { %v470_v2 = vpack.c.bf16 %v352_v1, %v351_v63 }
 0x230   :  { %471 = vst [vmem:[%s658_s4] sm:$0xff] %v470_v2   ;;  %v337_v42 = vpop.permute.xlu1 %336 }
 0x231   :  { %v342_v4 = vadd.f32 %v337_v42, %v314_v3 }
 0x233   :  { %vm346_vm15 = vcmp.ge.f32.partialorder %v342_v4, 0.0  ;;  %v350_v47 = vmul.f32 0.2, %v342_v4 }
 0x235   :  { %v354_v6 = vsel %vm346_vm15, %v342_v4, %v350_v47 }
 0x236   :  { %v475_v7 = vpack.c.bf16 %v354_v6, %v353_v5 }
 0x238   :  { %477 = vst [vmem:[%s658_s4 + $0x8] sm:$0xff] %v475_v7  }

// kernel: stage1d_forward.7
= control target key start
LH: loop header
LB: loop body
LE: loop exit
PB: predicated region body
PF: predicated region fallthrough
CT: control target
= control target key end

     0   :  { %s1448_s1 = inlined_call_operand.vmem [shape: bf16[512,128], index: 1, kind: input, shape index: {}]   ;;  %s1449_s0 = inlined_call_operand.vmem [shape: bf16[64,512], index: 0, kind: input, shape index: {}]   ;;  %s1450_s3 = inlined_call_operand.vmem [shape: f32[64,1], index: 3, kind: input, shape index: {}]   ;;  %s1451_s2 = inlined_call_operand.vmem [shape: f32[64,1], index: 2, kind: input, shape index: {}]   ;;  %s1452_s4 = inlined_call_operand.vmem [shape: f32[64,128], index: 4, kind: output, shape index: {}]  }
   0x1   :  { %v1027_v0 = vld [vmem:[%s1448_s1 + $0x38] sm:$0xff]  ;;  %v1026_v4 = vld [vmem:[%s1448_s1 + $0x30] sm:$0xff]  ;;  %v1025_v8 = vld [vmem:[%s1448_s1 + $0x28] sm:$0xff] }
   0x2   :  { %v1035_v1 = vld [vmem:[%s1448_s1 + $0x78] sm:$0xff]  ;;  %369 = vmatpush.bf16.msra.mxu0 %v1027_v0  ;;  %v1034_v5 = vld [vmem:[%s1448_s1 + $0x70] sm:$0xff]  ;;  %v1033_v9 = vld [vmem:[%s1448_s1 + $0x68] sm:$0xff] }
   0x3   :  { %v1043_v2 = vld [vmem:[%s1448_s1 + $0xb8] sm:$0xff]  ;;  %398 = vmatpush.bf16.msra.mxu1 %v1035_v1  ;;  %v1042_v6 = vld [vmem:[%s1448_s1 + $0xb0] sm:$0xff]  ;;  %v1041_v10 = vld [vmem:[%s1448_s1 + $0xa8] sm:$0xff] }
   0x4   :  { %v1051_v3 = vld [vmem:[%s1448_s1 + $0xf8] sm:$0xff]  ;;  %427 = vmatpush.bf16.msra.mxu2 %v1043_v2  ;;  %v1050_v7 = vld [vmem:[%s1448_s1 + $0xf0] sm:$0xff]  ;;  %v1049_v11 = vld [vmem:[%s1448_s1 + $0xe8] sm:$0xff] }
   0x5   :  { %456 = vmatpush.bf16.msra.mxu3 %v1051_v3  ;;  %v1024_v12 = vld [vmem:[%s1448_s1 + $0x20] sm:$0xff]  ;;  %v1023_v16 = vld [vmem:[%s1448_s1 + $0x18] sm:$0xff]  ;;  %v1022_v20 = vld [vmem:[%s1448_s1 + $0x10] sm:$0xff] }
   0x6   :  { %370 = vmatpush.bf16.msra.mxu0 %v1026_v4  ;;  %v1032_v13 = vld [vmem:[%s1448_s1 + $0x60] sm:$0xff]  ;;  %v1031_v17 = vld [vmem:[%s1448_s1 + $0x58] sm:$0xff]  ;;  %v1030_v21 = vld [vmem:[%s1448_s1 + $0x50] sm:$0xff] }
   0x7   :  { %399 = vmatpush.bf16.msra.mxu1 %v1034_v5  ;;  %v1040_v14 = vld [vmem:[%s1448_s1 + $0xa0] sm:$0xff]  ;;  %v1039_v18 = vld [vmem:[%s1448_s1 + $0x98] sm:$0xff]  ;;  %v1038_v22 = vld [vmem:[%s1448_s1 + $0x90] sm:$0xff] }
   0x8   :  { %428 = vmatpush.bf16.msra.mxu2 %v1042_v6  ;;  %v1048_v15 = vld [vmem:[%s1448_s1 + $0xe0] sm:$0xff]  ;;  %v1047_v19 = vld [vmem:[%s1448_s1 + $0xd8] sm:$0xff]  ;;  %v1046_v23 = vld [vmem:[%s1448_s1 + $0xd0] sm:$0xff] }
   0x9   :  { %457 = vmatpush.bf16.msra.mxu3 %v1050_v7  ;;  %v1021_v24 = vld [vmem:[%s1448_s1 + $0x8] sm:$0xff]  ;;  %v1020_v28 = vld [vmem:[%s1448_s1] sm:$0xff]  ;;  %v1006_v33 = vld [vmem:[%s1449_s0 + $0xc] sm:$0xf0] }
   0xa   :  { %371 = vmatpush.bf16.msra.mxu0 %v1025_v8  ;;  %v1029_v25 = vld [vmem:[%s1448_s1 + $0x48] sm:$0xff]  ;;  %v1028_v29 = vld [vmem:[%s1448_s1 + $0x40] sm:$0xff]  ;;  %v816_v35 = vld [vmem:[%s1449_s0 + $0x10] sm:$0xf0] }
   0xb   :  { %400 = vmatpush.bf16.msra.mxu1 %v1033_v9  ;;  %v1037_v26 = vld [vmem:[%s1448_s1 + $0x88] sm:$0xff]  ;;  %v1036_v30 = vld [vmem:[%s1448_s1 + $0x80] sm:$0xff]  ;;  %v1007_v37 = vld [vmem:[%s1449_s0 + $0x14] sm:$0xf0] }
   0xc   :  { %429 = vmatpush.bf16.msra.mxu2 %v1041_v10  ;;  %v1045_v27 = vld [vmem:[%s1448_s1 + $0xc8] sm:$0xff]  ;;  %v1044_v31 = vld [vmem:[%s1448_s1 + $0xc0] sm:$0xff]  ;;  %v824_v39 = vld [vmem:[%s1449_s0 + $0x18] sm:$0xf0] }
   0xd   :  { %458 = vmatpush.bf16.msra.mxu3 %v1049_v11  ;;  %v814_v32 = vld [vmem:[%s1449_s0] sm:$0xf]  ;;  %v1004_v34 = vld [vmem:[%s1449_s0 + $0x4] sm:$0xf]  ;;  %v822_v36 = vld [vmem:[%s1449_s0 + $0x8] sm:$0xf] }
   0xe   :  { %372 = vmatpush.bf16.msra.mxu0 %v1024_v12  ;;  %v1005_v38 = vld [vmem:[%s1449_s0 + $0xc] sm:$0xf]  ;;  %v815_v40 = vor.u32 %v1006_v33, %v814_v32  ;;  %v819_v41 = vor.u32 %v1004_v34, %v816_v35  ;;  %v823_v42 = vor.u32 %v1007_v37, %v822_v36  ;;  %v830_v44 = vld [vmem:[%s1449_s0 + $0x20] sm:$0xf]  ;;  %v1010_v45 = vld [vmem:[%s1449_s0 + $0x2c] sm:$0xf0] }
   0xf   :  { %401 = vmatpush.bf16.msra.mxu1 %v1032_v13  ;;  %v827_v43 = vor.u32 %v1005_v38, %v824_v39  ;;  %v1008_v46 = vld [vmem:[%s1449_s0 + $0x24] sm:$0xf]  ;;  %v832_v47 = vld [vmem:[%s1449_s0 + $0x30] sm:$0xf0]  ;;  %v838_v48 = vld [vmem:[%s1449_s0 + $0x28] sm:$0xf]  ;;  %v831_v52 = vor.u32 %v1010_v45, %v830_v44 }
  0x10   :  { %430 = vmatpush.bf16.msra.mxu2 %v1040_v14  ;;  %v1011_v49 = vld [vmem:[%s1449_s0 + $0x34] sm:$0xf0]  ;;  %v1009_v50 = vld [vmem:[%s1449_s0 + $0x2c] sm:$0xf]  ;;  %v840_v51 = vld [vmem:[%s1449_s0 + $0x38] sm:$0xf0]  ;;  %v835_v53 = vor.u32 %v1008_v46, %v832_v47 }
  0x11   :  { %459 = vmatpush.bf16.msra.mxu3 %v1048_v15  ;;  %v839_v54 = vor.u32 %v1011_v49, %v838_v48  ;;  %v843_v55 = vor.u32 %v1009_v50, %v840_v51  ;;  %v846_v56 = vld [vmem:[%s1449_s0 + $0x40] sm:$0xf]  ;;  %v1014_v57 = vld [vmem:[%s1449_s0 + $0x4c] sm:$0xf0]  ;;  %v1012_v58 = vld [vmem:[%s1449_s0 + $0x44] sm:$0xf] }
  0x12   :  { %373 = vmatpush.bf16.msra.mxu0 %v1023_v16  ;;  %v848_v59 = vld [vmem:[%s1449_s0 + $0x50] sm:$0xf0]  ;;  %v854_v60 = vld [vmem:[%s1449_s0 + $0x48] sm:$0xf]  ;;  %v1015_v61 = vld [vmem:[%s1449_s0 + $0x54] sm:$0xf0]  ;;  %v847_v0 = vor.u32 %v1014_v57, %v846_v56 }
  0x13   :  { %402 = vmatpush.bf16.msra.mxu1 %v1031_v17  ;;  %v1013_v62 = vld [vmem:[%s1449_s0 + $0x4c] sm:$0xf]  ;;  %v856_v63 = vld [vmem:[%s1449_s0 + $0x58] sm:$0xf0]  ;;  %v851_v1 = vor.u32 %v1012_v58, %v848_v59  ;;  %v855_v2 = vor.u32 %v1015_v61, %v854_v60  ;;  %v862_v4 = vld [vmem:[%s1449_s0 + $0x60] sm:$0xf] }
  0x14   :  { %431 = vmatpush.bf16.msra.mxu2 %v1039_v18  ;;  %v859_v3 = vor.u32 %v1013_v62, %v856_v63  ;;  %v1018_v5 = vld [vmem:[%s1449_s0 + $0x6c] sm:$0xf0]  ;;  %v1016_v6 = vld [vmem:[%s1449_s0 + $0x64] sm:$0xf]  ;;  %v864_v7 = vld [vmem:[%s1449_s0 + $0x70] sm:$0xf0]  ;;  %v485_v18 = vlaneseq }
  0x15   :  { %460 = vmatpush.bf16.msra.mxu3 %v1047_v19  ;;  %v870_v8 = vld [vmem:[%s1449_s0 + $0x68] sm:$0xf]  ;;  %v1019_v9 = vld [vmem:[%s1449_s0 + $0x74] sm:$0xf0]  ;;  %v1017_v10 = vld [vmem:[%s1449_s0 + $0x6c] sm:$0xf]  ;;  %v863_v12 = vor.u32 %v1018_v5, %v862_v4  ;;  %v867_v13 = vor.u32 %v1016_v6, %v864_v7 }
  0x16   :  { %374 = vmatpush.bf16.msra.mxu0 %v1022_v20  ;;  %v872_v11 = vld [vmem:[%s1449_s0 + $0x78] sm:$0xf0]  ;;  %v871_v14 = vor.u32 %v1019_v9, %v870_v8  ;;  %v1290_v20 = vand.u32 127, %v485_v18 }
  0x17   :  { %403 = vmatpush.bf16.msra.mxu1 %v1030_v21  ;;  %v875_v15 = vor.u32 %v1017_v10, %v872_v11 }
  0x18   :  { %432 = vmatpush.bf16.msra.mxu2 %v1038_v22  ;;  %vm487_vm0 = vcmp.lt.s32.totalorder %v1290_v20, 32  ;;  %v724_v20 = vld [vmem:[%s1450_s3 + $0x20] sm:$0xff] }
  0x19   :  { %461 = vmatpush.bf16.msra.mxu3 %v1046_v23 }
  0x1a   :  { %375 = vmatpush.bf16.msra.mxu0 %v1021_v24 }
  0x1b   :  { %404 = vmatpush.bf16.msra.mxu1 %v1029_v25 }
  0x1c   :  { %433 = vmatpush.bf16.msra.mxu2 %v1037_v26 }
  0x1d   :  { %462 = vmatpush.bf16.msra.mxu3 %v1045_v27 }
  0x1e   :  { %376 = vmatpush.bf16.msra.mxu0 %v1020_v28 }
  0x1f   :  { %405 = vmatpush.bf16.msra.mxu1 %v1028_v29 }
  0x20   :  { %434 = vmatpush.bf16.msra.mxu2 %v1036_v30 }
  0x21   :  { %463 = vmatpush.bf16.msra.mxu3 %v1044_v31  ;;  %377 = vmatmul.bf16.vlgmr.msra.gmra.mxu0 %v815_v40 }
  0x22   :  { %406 = vmatmul.bf16.vlgmr.msra.gmra.mxu1 %v819_v41 }
  0x23   :  { %435 = vmatmul.bf16.vlgmr.msra.gmra.mxu2 %v823_v42 }
  0x24   :  { %464 = vmatmul.bf16.vlgmr.msra.gmra.mxu3 %v827_v43 }
  0x31   :  { %382 = vmatmul.bf16.gmra.mxu0 %v831_v52 }
  0x32   :  { %411 = vmatmul.bf16.gmra.mxu1 %v835_v53  ;;  %v1072_v53 = vmov 0  }
  0x33   :  { %440 = vmatmul.bf16.gmra.mxu2 %v839_v54  ;;  %1053 = vset.pattern.permute.xlu1 %v1072_v53 }
  0x34   :  { %469 = vmatmul.bf16.gmra.mxu3 %v843_v55  ;;  %1054 = vset.pattern.permute.xlu0 %v1072_v53 }
  0x35   :  { %1055 = vset.pattern.permute.xlu2 %v1072_v53 }
  0x41   :  { %387 = vmatmul.bf16.gmra.mxu0 %v847_v0 }
  0x42   :  { %416 = vmatmul.bf16.gmra.mxu1 %v851_v1 }
  0x43   :  { %445 = vmatmul.bf16.gmra.mxu2 %v855_v2 }
  0x44   :  { %474 = vmatmul.bf16.gmra.mxu3 %v859_v3 }
  0x51   :  { %392 = vmatmul.bf16.gmra.mxu0 %v863_v12 }
  0x52   :  { %421 = vmatmul.bf16.gmra.mxu1 %v867_v13 }
  0x53   :  { %450 = vmatmul.bf16.gmra.mxu2 %v871_v14 }
  0x54   :  { %479 = vmatmul.bf16.gmra.mxu3 %v875_v15 }
  0x9e   :  { %v378_v16 = vpop.f32.mrf.mxu0 }
  0x9f   :  { %v407_v17 = vpop.f32.mrf.mxu1 }
  0xa0   :  { %v408_v19 = vadd.f32 %v407_v17, %v378_v16 }
  0xa6   :  { %v436_v21 = vpop.f32.mrf.mxu2  ;;  %v380_v24 = vpop.f32.mrf.mxu0 }
  0xa7   :  { %v465_v22 = vpop.f32.mrf.mxu3  ;;  %v437_v23 = vadd.f32 %v436_v21, %v408_v19  ;;  %v409_v25 = vpop.f32.mrf.mxu1  ;;  %v720_v19 = vld [vmem:[%s1450_s3] sm:$0xff] }
  0xa8   :  { %v410_v28 = vadd.f32 %v409_v25, %v380_v24 }
  0xa9   :  { %v1293_v26 = vadd.f32 %v465_v22, %v437_v23 }
  0xab   :  { %v488_v27 = vsel %vm487_vm0, %v1293_v26, 0.0 }
  0xac   :  { %496 = vadd.xlane.f32.xlu0 %v488_v27 }
  0xae   :  { %v438_v29 = vpop.f32.mrf.mxu2  ;;  %v383_v32 = vpop.f32.mrf.mxu0 }
  0xaf   :  { %v467_v30 = vpop.f32.mrf.mxu3  ;;  %v439_v31 = vadd.f32 %v438_v29, %v410_v28  ;;  %v412_v33 = vpop.f32.mrf.mxu1 }
  0xb0   :  { %v413_v35 = vadd.f32 %v412_v33, %v383_v32 }
  0xb1   :  { %v1298_v34 = vadd.f32 %v467_v30, %v439_v31 }
  0xb3   :  { %v489_v36 = vsel %vm487_vm0, %v1298_v34, 0.0 }
  0xb4   :  { %498 = vadd.xlane.f32.xlu0 %v489_v36 }
  0xb6   :  { %v441_v37 = vpop.f32.mrf.mxu2  ;;  %v385_v40 = vpop.f32.mrf.mxu0 }
  0xb7   :  { %v470_v38 = vpop.f32.mrf.mxu3  ;;  %v442_v39 = vadd.f32 %v441_v37, %v413_v35  ;;  %v414_v41 = vpop.f32.mrf.mxu1 }
  0xb8   :  { %v415_v44 = vadd.f32 %v414_v41, %v385_v40 }
  0xb9   :  { %v1303_v42 = vadd.f32 %v470_v38, %v442_v39 }
  0xbb   :  { %v490_v43 = vsel %vm487_vm0, %v1303_v42, 0.0 }
  0xbc   :  { %500 = vadd.xlane.f32.xlu1 %v490_v43 }
  0xbe   :  { %v443_v45 = vpop.f32.mrf.mxu2  ;;  %v388_v48 = vpop.f32.mrf.mxu0 }
  0xbf   :  { %v472_v46 = vpop.f32.mrf.mxu3  ;;  %v444_v47 = vadd.f32 %v443_v45, %v415_v44  ;;  %v417_v49 = vpop.f32.mrf.mxu1 }
  0xc0   :  { %v418_v51 = vadd.f32 %v417_v49, %v388_v48 }
  0xc1   :  { %v1308_v50 = vadd.f32 %v472_v46, %v444_v47 }
  0xc3   :  { %v491_v52 = vsel %vm487_vm0, %v1308_v50, 0.0 }
  0xc4   :  { %502 = vadd.xlane.f32.xlu1 %v491_v52 }
  0xc6   :  { %v446_v54 = vpop.f32.mrf.mxu2  ;;  %v390_v57 = vpop.f32.mrf.mxu0 }
  0xc7   :  { %v475_v55 = vpop.f32.mrf.mxu3  ;;  %v447_v56 = vadd.f32 %v446_v54, %v418_v51  ;;  %v419_v58 = vpop.f32.mrf.mxu1 }
  0xc8   :  { %v420_v61 = vadd.f32 %v419_v58, %v390_v57 }
  0xc9   :  { %v476_v59 = vadd.f32 %v475_v55, %v447_v56 }
  0xcb   :  { %v492_v60 = vsel %vm487_vm0, %v476_v59, 0.0 }
  0xcc   :  { %504 = vadd.xlane.f32.xlu2 %v492_v60 }
  0xce   :  { %v448_v62 = vpop.f32.mrf.mxu2  ;;  %v393_v1 = vpop.f32.mrf.mxu0 }
  0xcf   :  { %v477_v63 = vpop.f32.mrf.mxu3  ;;  %v449_v0 = vadd.f32 %v448_v62, %v420_v61  ;;  %v422_v2 = vpop.f32.mrf.mxu1  ;;  %v723_v61 = vld [vmem:[%s1450_s3 + $0x18] sm:$0xff]  ;;  %v721_v62 = vld [vmem:[%s1450_s3 + $0x8] sm:$0xff] }
  0xd0   :  { %v423_v4 = vadd.f32 %v422_v2, %v393_v1 }
  0xd1   :  { %v478_v3 = vadd.f32 %v477_v63, %v449_v0  ;;  %v722_v63 = vld [vmem:[%s1450_s3 + $0x10] sm:$0xff] }
  0xd3   :  { %v493_v5 = vsel %vm487_vm0, %v478_v3, 0.0 }
  0xd4   :  { %506 = vadd.xlane.f32.xlu2 %v493_v5 }
  0xd6   :  { %v451_v6 = vpop.f32.mrf.mxu2  ;;  %v395_v10 = vpop.f32.mrf.mxu0 }
  0xd7   :  { %v480_v7 = vpop.f32.mrf.mxu3  ;;  %v452_v8 = vadd.f32 %v451_v6, %v423_v4  ;;  %v424_v11 = vpop.f32.mrf.mxu1 }
  0xd8   :  { %v425_v13 = vadd.f32 %v424_v11, %v395_v10 }
  0xd9   :  { %v481_v9 = vadd.f32 %v480_v7, %v452_v8 }
  0xdb   :  { %v494_v12 = vsel %vm487_vm0, %v481_v9, 0.0 }
  0xdc   :  { %508 = vadd.xlane.f32.xlu0 %v494_v12 }
  0xde   :  { %v453_v14 = vpop.f32.mrf.mxu2 }
  0xdf   :  { %v454_v15 = vadd.f32 %v453_v14, %v425_v13  ;;  %v482_v16 = vpop.f32.mrf.mxu3 }
  0xe1   :  { %v483_v17 = vadd.f32 %v482_v16, %v454_v15 }
  0xe3   :  { %v495_v18 = vsel %vm487_vm0, %v483_v17, 0.0 }
  0xe4   :  { %510 = vadd.xlane.f32.xlu1 %v495_v18  ;;  %v656_v18 = vld [vmem:[%s1451_s2] sm:$0xff] }
  0xfd   :  { %730 = vperm.xlu1 %1053, %v720_v19  }
 0x11f   :  { %v497_v21 = vpop.xlane.xlu0 %496 }
 0x120   :  { %v512_v22 = vmul.f32 0.03125, %v497_v21 }
 0x122   :  { %v1325_v23 = vsub.f32 %v1293_v26, %v512_v22 }
 0x124   :  { %v528_v24 = vsel %vm487_vm0, %v1325_v23, 0.0 }
 0x125   :  { %v536_v25 = vmul.f32 %v528_v24, %v528_v24 }
 0x127   :  { %544 = vadd.xlane.f32.xlu2 %v536_v25  ;;  %v499_v27 = vpop.xlane.xlu0 %498 }
 0x128   :  { %v513_v28 = vmul.f32 0.03125, %v499_v27 }
 0x12a   :  { %v1331_v29 = vsub.f32 %v1298_v34, %v513_v28 }
 0x12c   :  { %v529_v30 = vsel %vm487_vm0, %v1331_v29, 0.0 }
 0x12d   :  { %v537_v31 = vmul.f32 %v529_v30, %v529_v30 }
 0x12f   :  { %v501_v32 = vpop.xlane.xlu1 %500  ;;  %546 = vadd.xlane.f32.xlu0 %v537_v31 }
 0x130   :  { %v514_v26 = vmul.f32 0.03125, %v501_v32 }
 0x132   :  { %v1337_v33 = vsub.f32 %v1303_v42, %v514_v26 }
 0x134   :  { %v530_v35 = vsel %vm487_vm0, %v1337_v33, 0.0 }
 0x135   :  { %v538_v36 = vmul.f32 %v530_v35, %v530_v35  ;;  %v657_v35 = vld [vmem:[%s1451_s2 + $0x8] sm:$0xff] }
 0x137   :  { %548 = vadd.xlane.f32.xlu1 %v538_v36  ;;  %v503_v37 = vpop.xlane.xlu1 %502 }
 0x138   :  { %v515_v34 = vmul.f32 0.03125, %v503_v37 }
 0x13a   :  { %v1343_v38 = vsub.f32 %v1308_v50, %v515_v34 }
 0x13c   :  { %v531_v39 = vsel %vm487_vm0, %v1343_v38, 0.0 }
 0x13d   :  { %v539_v40 = vmul.f32 %v531_v39, %v531_v39 }
 0x13f   :  { %v505_v41 = vpop.xlane.xlu2 %504  ;;  %550 = vadd.xlane.f32.xlu2 %v539_v40 }
 0x140   :  { %v516_v42 = vmul.f32 0.03125, %v505_v41 }
 0x142   :  { %v1348_v43 = vsub.f32 %v476_v59, %v516_v42 }
 0x144   :  { %v532_v44 = vsel %vm487_vm0, %v1348_v43, 0.0 }
 0x145   :  { %v540_v45 = vmul.f32 %v532_v44, %v532_v44 }
 0x147   :  { %v507_v46 = vpop.xlane.xlu2 %506  ;;  %552 = vadd.xlane.f32.xlu0 %v540_v45 }
 0x148   :  { %v517_v47 = vmul.f32 0.03125, %v507_v46 }
 0x14a   :  { %v1353_v48 = vsub.f32 %v478_v3, %v517_v47 }
 0x14c   :  { %v533_v49 = vsel %vm487_vm0, %v1353_v48, 0.0 }
 0x14d   :  { %v541_v50 = vmul.f32 %v533_v49, %v533_v49  ;;  %v658_v49 = vld [vmem:[%s1451_s2 + $0x10] sm:$0xff] }
 0x14f   :  { %554 = vadd.xlane.f32.xlu1 %v541_v50  ;;  %v509_v51 = vpop.xlane.xlu0 %508 }
 0x150   :  { %v518_v52 = vmul.f32 0.03125, %v509_v51 }
 0x152   :  { %v1358_v53 = vsub.f32 %v481_v9, %v518_v52 }
 0x154   :  { %v534_v54 = vsel %vm487_vm0, %v1358_v53, 0.0 }
 0x155   :  { %v542_v55 = vmul.f32 %v534_v54, %v534_v54 }
 0x157   :  { %v511_v56 = vpop.xlane.xlu1 %510  ;;  %556 = vadd.xlane.f32.xlu2 %v542_v55 }
 0x158   :  { %v519_v57 = vmul.f32 0.03125, %v511_v56 }
 0x15a   :  { %v1363_v58 = vsub.f32 %v483_v17, %v519_v57 }
 0x15c   :  { %v535_v59 = vsel %vm487_vm0, %v1363_v58, 0.0 }
 0x15d   :  { %v543_v60 = vmul.f32 %v535_v59, %v535_v59 }
 0x15f   :  { %558 = vadd.xlane.f32.xlu0 %v543_v60 }
 0x168   :  { %745 = vperm.xlu1 %1053, %v723_v61  }
 0x16f   :  { %740 = vperm.xlu2 %1055, %v722_v63   ;;  %v1380_v3 = vpop.permute.xlu1 %730  ;;  %v659_v63 = vld [vmem:[%s1451_s2 + $0x18] sm:$0xff] }
 0x173   :  { %735 = vperm.xlu0 %1054, %v721_v62  }
 0x17b   :  { %750 = vperm.xlu0 %1054, %v724_v20  }
 0x19a   :  { %v545_v0 = vpop.xlane.xlu2 %544 }
 0x19b   :  { %v560_v1 = vmul.f32 0.03125, %v545_v0 }
 0x19d   :  { %v568_v2 = vadd.f32 1e-05, %v560_v1  ;;  %v727_v1 = vld [vmem:[%s1450_s3 + $0x38] sm:$0xff] }
 0x19f   :  { %1056 = vrsqrt.f32 %v568_v2  ;;  %vm582_vm2 = vweird.f32 %v568_v2 }
 0x1a2   :  { %v547_v4 = vpop.xlane.xlu0 %546 }
 0x1a3   :  { %v561_v5 = vmul.f32 0.03125, %v547_v4 }
 0x1a5   :  { %v1057_v6 = vpop.eup %1056  ;;  %v569_v7 = vadd.f32 1e-05, %v561_v5 }
 0x1a6   :  { %v577_v8 = vmul.f32 %v1057_v6, %v568_v2  ;;  %vm583_vm1 = vweird.f32 %v1057_v6 }
 0x1a7   :  { %1058 = vrsqrt.f32 %v569_v7  ;;  %vm584_vm3 = vmor %vm582_vm2, %vm583_vm1  ;;  %vm592_vm5 = vweird.f32 %v569_v7 }
 0x1a8   :  { %v578_v9 = vmul.f32 %v1057_v6, %v577_v8 }
 0x1aa   :  { %v579_v10 = vmul.f32 0.5, %v578_v9  ;;  %v549_v11 = vpop.xlane.xlu1 %548 }
 0x1ab   :  { %v562_v12 = vmul.f32 0.03125, %v549_v11 }
 0x1ac   :  { %v580_v13 = vsub.f32 1.5, %v579_v10 }
 0x1ad   :  { %v1059_v14 = vpop.eup %1058  ;;  %v570_v15 = vadd.f32 1e-05, %v562_v12  ;;  %v660_v12 = vld [vmem:[%s1451_s2 + $0x20] sm:$0xff] }
 0x1ae   :  { %v587_v16 = vmul.f32 %v1059_v14, %v569_v7  ;;  %v581_v17 = vmul.f32 %v1057_v6, %v580_v13  ;;  %vm593_vm4 = vweird.f32 %v1059_v14 }
 0x1af   :  { %1060 = vrsqrt.f32 %v570_v15  ;;  %vm594_vm6 = vmor %vm592_vm5, %vm593_vm4  ;;  %vm602_vm8 = vweird.f32 %v570_v15 }
 0x1b0   :  { %v588_v19 = vmul.f32 %v1059_v14, %v587_v16  ;;  %v585_v21 = vsel %vm584_vm3, %v1057_v6, %v581_v17 }
 0x1b1   :  { %v664_v22 = vmul.f32 %v656_v18, %v585_v21 }
 0x1b2   :  { %v589_v24 = vmul.f32 0.5, %v588_v19  ;;  %v551_v25 = vpop.xlane.xlu2 %550 }
 0x1b3   :  { %v563_v27 = vmul.f32 0.03125, %v551_v25  ;;  %674 = vperm.xlu1 %1053, %v664_v22  }
 0x1b4   :  { %v590_v28 = vsub.f32 1.5, %v589_v24 }
 0x1b5   :  { %v1061_v30 = vpop.eup %1060  ;;  %v571_v31 = vadd.f32 1e-05, %v563_v27  ;;  %v661_v27 = vld [vmem:[%s1451_s2 + $0x28] sm:$0xff] }
 0x1b6   :  { %v597_v32 = vmul.f32 %v1061_v30, %v570_v15  ;;  %v591_v26 = vmul.f32 %v1059_v14, %v590_v28  ;;  %vm603_vm7 = vweird.f32 %v1061_v30 }
 0x1b7   :  { %1062 = vrsqrt.f32 %v571_v31  ;;  %vm604_vm9 = vmor %vm602_vm8, %vm603_vm7  ;;  %vm612_vm11 = vweird.f32 %v571_v31 }
 0x1b8   :  { %v598_v36 = vmul.f32 %v1061_v30, %v597_v32  ;;  %v595_v37 = vsel %vm594_vm6, %v1059_v14, %v591_v26 }
 0x1b9   :  { %v665_v34 = vmul.f32 %v657_v35, %v595_v37 }
 0x1ba   :  { %v599_v39 = vmul.f32 0.5, %v598_v36  ;;  %v553_v40 = vpop.xlane.xlu0 %552 }
 0x1bb   :  { %v564_v41 = vmul.f32 0.03125, %v553_v40  ;;  %679 = vperm.xlu2 %1055, %v665_v34   ;;  %v662_v34 = vld [vmem:[%s1451_s2 + $0x30] sm:$0xff] }
 0x1bc   :  { %v600_v42 = vsub.f32 1.5, %v599_v39 }
 0x1bd   :  { %v1063_v44 = vpop.eup %1062  ;;  %v572_v45 = vadd.f32 1e-05, %v564_v41 }
 0x1be   :  { %v607_v46 = vmul.f32 %v1063_v44, %v571_v31  ;;  %v601_v47 = vmul.f32 %v1061_v30, %v600_v42  ;;  %vm613_vm10 = vweird.f32 %v1063_v44 }
 0x1bf   :  { %1064 = vrsqrt.f32 %v572_v45  ;;  %vm614_vm12 = vmor %vm612_vm11, %vm613_vm10  ;;  %vm622_vm14 = vweird.f32 %v572_v45 }
 0x1c0   :  { %v608_v50 = vmul.f32 %v1063_v44, %v607_v46  ;;  %v605_v51 = vsel %vm604_vm9, %v1061_v30, %v601_v47  ;;  %v663_v46 = vld [vmem:[%s1451_s2 + $0x38] sm:$0xff]  ;;  %v726_v47 = vld [vmem:[%s1450_s3 + $0x30] sm:$0xff] }
 0x1c1   :  { %v666_v52 = vmul.f32 %v658_v49, %v605_v51  ;;  %v725_v51 = vld [vmem:[%s1450_s3 + $0x28] sm:$0xff] }
 0x1c2   :  { %v609_v54 = vmul.f32 0.5, %v608_v50  ;;  %v555_v55 = vpop.xlane.xlu1 %554 }
 0x1c3   :  { %v565_v56 = vmul.f32 0.03125, %v555_v55  ;;  %684 = vperm.xlu0 %1054, %v666_v52  }
 0x1c4   :  { %v610_v57 = vsub.f32 1.5, %v609_v54 }
 0x1c5   :  { %v1065_v59 = vpop.eup %1064  ;;  %v573_v60 = vadd.f32 1e-05, %v565_v56 }
 0x1c6   :  { %v617_v61 = vmul.f32 %v1065_v59, %v572_v45  ;;  %v611_v62 = vmul.f32 %v1063_v44, %v610_v57  ;;  %vm623_vm13 = vweird.f32 %v1065_v59 }
 0x1c7   :  { %1066 = vrsqrt.f32 %v573_v60  ;;  %vm624_vm15 = vmor %vm622_vm14, %vm623_vm13  ;;  %vm632_vm1 = vweird.f32 %v573_v60 }
 0x1c8   :  { %v618_v0 = vmul.f32 %v1065_v59, %v617_v61  ;;  %v615_v20 = vsel %vm614_vm12, %v1063_v44, %v611_v62 }
 0x1c9   :  { %v667_v2 = vmul.f32 %v659_v63, %v615_v20 }
 0x1ca   :  { %v619_v4 = vmul.f32 0.5, %v618_v0  ;;  %v557_v5 = vpop.xlane.xlu2 %556 }
 0x1cb   :  { %v566_v6 = vmul.f32 0.03125, %v557_v5  ;;  %689 = vperm.xlu2 %1055, %v667_v2   ;;  %765 = vperm.xlu0 %1054, %v727_v1  }
 0x1cc   :  { %v620_v7 = vsub.f32 1.5, %v619_v4 }
 0x1cd   :  { %v1067_v8 = vpop.eup %1066  ;;  %v574_v9 = vadd.f32 1e-05, %v566_v6 }
 0x1ce   :  { %v627_v10 = vmul.f32 %v1067_v8, %v573_v60  ;;  %v621_v11 = vmul.f32 %v1065_v59, %v620_v7  ;;  %vm633_vm0 = vweird.f32 %v1067_v8 }
 0x1cf   :  { %1068 = vrsqrt.f32 %v574_v9  ;;  %vm634_vm2 = vmor %vm632_vm1, %vm633_vm0  ;;  %vm642_vm4 = vweird.f32 %v574_v9 }
 0x1d0   :  { %v628_v13 = vmul.f32 %v1067_v8, %v627_v10  ;;  %v625_v14 = vsel %vm624_vm15, %v1065_v59, %v621_v11 }
 0x1d1   :  { %v668_v15 = vmul.f32 %v660_v12, %v625_v14 }
 0x1d2   :  { %v629_v16 = vmul.f32 0.5, %v628_v13  ;;  %v559_v17 = vpop.xlane.xlu0 %558  ;;  %v741_v52 = vpop.permute.xlu2 %740 }
 0x1d3   :  { %v567_v18 = vmul.f32 0.03125, %v559_v17  ;;  %694 = vperm.xlu1 %1053, %v668_v15  }
 0x1d4   :  { %v630_v19 = vsub.f32 1.5, %v629_v16 }
 0x1d5   :  { %v1069_v21 = vpop.eup %1068  ;;  %v575_v22 = vadd.f32 1e-05, %v567_v18 }
 0x1d6   :  { %v637_v24 = vmul.f32 %v1069_v21, %v574_v9  ;;  %v631_v25 = vmul.f32 %v1067_v8, %v630_v19  ;;  %vm643_vm3 = vweird.f32 %v1069_v21 }
 0x1d7   :  { %1070 = vrsqrt.f32 %v575_v22  ;;  %vm644_vm5 = vmor %vm642_vm4, %vm643_vm3  ;;  %vm652_vm7 = vweird.f32 %v575_v22 }
 0x1d8   :  { %v638_v28 = vmul.f32 %v1069_v21, %v637_v24  ;;  %v635_v30 = vsel %vm634_vm2, %v1067_v8, %v631_v25 }
 0x1d9   :  { %v669_v31 = vmul.f32 %v661_v27, %v635_v30 }
 0x1da   :  { %v639_v32 = vmul.f32 0.5, %v638_v28  ;;  %v746_v61 = vpop.permute.xlu1 %745 }
 0x1db   :  { %699 = vperm.xlu2 %1055, %v669_v31  }
 0x1dc   :  { %v640_v26 = vsub.f32 1.5, %v639_v32 }
 0x1dd   :  { %v1071_v35 = vpop.eup %1070 }
 0x1de   :  { %v647_v36 = vmul.f32 %v1071_v35, %v575_v22  ;;  %v641_v37 = vmul.f32 %v1069_v21, %v640_v26  ;;  %vm653_vm6 = vweird.f32 %v1071_v35 }
 0x1df   :  { %vm654_vm8 = vmor %vm652_vm7, %vm653_vm6 }
 0x1e0   :  { %v648_v39 = vmul.f32 %v1071_v35, %v647_v36  ;;  %v645_v40 = vsel %vm644_vm5, %v1069_v21, %v641_v37 }
 0x1e1   :  { %v670_v41 = vmul.f32 %v662_v34, %v645_v40 }
 0x1e2   :  { %v649_v42 = vmul.f32 0.5, %v648_v39 }
 0x1e3   :  { %704 = vperm.xlu1 %1053, %v670_v41  }
 0x1e4   :  { %v650_v44 = vsub.f32 1.5, %v649_v42 }
 0x1e5   :  { %v736_v55 = vpop.permute.xlu0 %735 }
 0x1e6   :  { %v651_v45 = vmul.f32 %v1071_v35, %v650_v44 }
 0x1e8   :  { %v655_v49 = vsel %vm654_vm8, %v1071_v35, %v651_v45 }
 0x1e9   :  { %v671_v50 = vmul.f32 %v663_v46, %v655_v49 }
 0x1eb   :  { %760 = vperm.xlu1 %1053, %v726_v47   ;;  %709 = vperm.xlu2 %1055, %v671_v50  }
 0x1ed   :  { %v751_v5 = vpop.permute.xlu0 %750 }
 0x1f3   :  { %755 = vperm.xlu2 %1055, %v725_v51  }
 0x215   :  { %v680_v54 = vpop.permute.xlu2 %679 }
 0x216   :  { %v713_v56 = vmul.f32 %v680_v54, %v1331_v29 }
 0x218   :  { %v769_v57 = vadd.f32 %v736_v55, %v713_v56 }
 0x21a   :  { %vm777_vm9 = vcmp.ge.f32.partialorder %v769_v57, 0.0  ;;  %v785_v59 = vmul.f32 0.2, %v769_v57 }
 0x21c   :  { %v793_v60 = vsel %vm777_vm9, %v769_v57, %v785_v59 }
 0x21d   :  { %801 = vst [vmem:[%s1452_s4 + $0x8] sm:$0xff] %v793_v60 }
 0x225   :  { %v675_v62 = vpop.permute.xlu1 %674  ;;  %v690_v63 = vpop.permute.xlu2 %689 }
 0x226   :  { %v712_v0 = vmul.f32 %v675_v62, %v1325_v23  ;;  %v715_v20 = vmul.f32 %v690_v63, %v1343_v38 }
 0x228   :  { %v768_v1 = vadd.f32 %v1380_v3, %v712_v0  ;;  %v771_v2 = vadd.f32 %v746_v61, %v715_v20 }
 0x22a   :  { %vm776_vm10 = vcmp.ge.f32.partialorder %v768_v1, 0.0  ;;  %v784_v29 = vmul.f32 0.2, %v768_v1  ;;  %vm779_vm11 = vcmp.ge.f32.partialorder %v771_v2, 0.0  ;;  %v787_v4 = vmul.f32 0.2, %v771_v2 }
 0x22c   :  { %v792_v6 = vsel %vm776_vm10, %v768_v1, %v784_v29  ;;  %v795_v7 = vsel %vm779_vm11, %v771_v2, %v787_v4 }
 0x22d   :  { %800 = vst [vmem:[%s1452_s4] sm:$0xff] %v792_v6 }
 0x22e   :  { %803 = vst [vmem:[%s1452_s4 + $0x18] sm:$0xff] %v795_v7 }
 0x235   :  { %v685_v23 = vpop.permute.xlu0 %684  ;;  %v700_v10 = vpop.permute.xlu2 %699 }
 0x236   :  { %v714_v38 = vmul.f32 %v685_v23, %v1337_v33  ;;  %v717_v19 = vmul.f32 %v700_v10, %v1353_v48 }
 0x238   :  { %v770_v3 = vadd.f32 %v741_v52, %v714_v38 }
 0x23a   :  { %vm778_vm12 = vcmp.ge.f32.partialorder %v770_v3, 0.0  ;;  %v786_v8 = vmul.f32 0.2, %v770_v3 }
 0x23c   :  { %v794_v9 = vsel %vm778_vm12, %v770_v3, %v786_v8 }
 0x23d   :  { %802 = vst [vmem:[%s1452_s4 + $0x10] sm:$0xff] %v794_v9  ;;  %v766_v15 = vpop.permute.xlu0 %765 }
 0x245   :  { %v695_v11 = vpop.permute.xlu1 %694  ;;  %v710_v12 = vpop.permute.xlu2 %709 }
 0x246   :  { %v716_v13 = vmul.f32 %v695_v11, %v1348_v43  ;;  %v719_v14 = vmul.f32 %v710_v12, %v1363_v58 }
 0x248   :  { %v772_v16 = vadd.f32 %v751_v5, %v716_v13  ;;  %v775_v17 = vadd.f32 %v766_v15, %v719_v14 }
 0x24a   :  { %vm780_vm13 = vcmp.ge.f32.partialorder %v772_v16, 0.0  ;;  %v788_v33 = vmul.f32 0.2, %v772_v16  ;;  %vm783_vm14 = vcmp.ge.f32.partialorder %v775_v17, 0.0  ;;  %v791_v18 = vmul.f32 0.2, %v775_v17 }
 0x24c   :  { %v796_v21 = vsel %vm780_vm13, %v772_v16, %v788_v33  ;;  %v799_v22 = vsel %vm783_vm14, %v775_v17, %v791_v18 }
 0x24d   :  { %804 = vst [vmem:[%s1452_s4 + $0x20] sm:$0xff] %v796_v21  ;;  %v756_v24 = vpop.permute.xlu2 %755 }
 0x24e   :  { %807 = vst [vmem:[%s1452_s4 + $0x38] sm:$0xff] %v799_v22  ;;  %v773_v43 = vadd.f32 %v756_v24, %v717_v19 }
 0x250   :  { %vm781_vm15 = vcmp.ge.f32.partialorder %v773_v43, 0.0  ;;  %v789_v58 = vmul.f32 0.2, %v773_v43 }
 0x252   :  { %v797_v25 = vsel %vm781_vm15, %v773_v43, %v789_v58 }
 0x253   :  { %805 = vst [vmem:[%s1452_s4 + $0x28] sm:$0xff] %v797_v25 }
 0x255   :  { %v705_v48 = vpop.permute.xlu1 %704 }
 0x256   :  { %v718_v27 = vmul.f32 %v705_v48, %v1358_v53 }
 0x25d   :  { %v761_v28 = vpop.permute.xlu1 %760 }
 0x25e   :  { %v774_v30 = vadd.f32 %v761_v28, %v718_v27 }
 0x260   :  { %vm782_vm0 = vcmp.ge.f32.partialorder %v774_v30, 0.0  ;;  %v790_v31 = vmul.f32 0.2, %v774_v30 }
 0x262   :  { %v798_v32 = vsel %vm782_vm0, %v774_v30, %v790_v31 }
 0x263   :  { %806 = vst [vmem:[%s1452_s4 + $0x30] sm:$0xff] %v798_v32 }

</bundles_post_ra>
